<compile_context>
chip_gen: v6e
topology: v6e:2x2x1
jax: 0.10.0
libtpu: 0.0.40
codegen_flags: <defaults>
</compile_context>

<pallas_src>
import functools

import jax
import jax.numpy as jnp
from jax.experimental import pallas as pl
from jax.experimental.pallas import tpu as pltpu


def _round_up(a, b):
    return (a + b - 1) // b * b


def _device_info():
    """(num_tensorcores, has_bf16_vpu) with conservative fallbacks."""
    try:
        kind = jax.devices()[0].device_kind.lower()
    except Exception:
        kind = ""
    if not kind:
        return 1, False
    num_cores = 2 if ("v7" in kind or "7x" in kind) else 1
    has_bf16_vpu = not any(t in kind for t in ("v2", "v3", "v4", "v5"))
    return num_cores, has_bf16_vpu


def _vae_fused_kernel(
    x_ref, eps_ref,
    w1_ref, b1_ref, w2_ref, b2_ref,
    whead_ref, bhead_ref,
    wd1_ref, bd1_ref, wd2_ref, bd2_ref, wd3_ref, bd3_ref,
    out_ref,
    *, latent_size, slot_l, slot_x, act_dtype,
):
    wdt = w1_ref.dtype  # MXU operand dtype (bf16 or f32)

    def dense(a, w_ref, b_ref, out_dtype):
        # MXU matmul in the weight dtype, f32 accumulation, f32 bias add.
        y = jnp.dot(a.astype(wdt), w_ref[...],
                    preferred_element_type=jnp.float32) + b_ref[...]
        return y.astype(out_dtype)

    # --- encoder: Linear -> ReLU -> Linear -> ReLU (activations in act_dtype) ---
    h = jnp.maximum(dense(x_ref[...], w1_ref, b1_ref, act_dtype), 0.0)
    h = jnp.maximum(dense(h, w2_ref, b2_ref, act_dtype), 0.0)

    # --- fused latent heads: one matmul -> [mu | log_var], each 128-lane padded ---
    head = dense(h, whead_ref, bhead_ref, jnp.float32)       # (tb, 2*slot_l)
    mu = head[:, :slot_l]                                     # lane-group-aligned slices
    log_var = head[:, slot_l:]

    # --- reparameterize: z = mu + eps * exp(0.5 * log_var)  (f32, EUP exp) ---
    eps = eps_ref[...].astype(jnp.float32)
    if slot_l > latent_size:
        # zero-fill so padded lanes of z are exactly 0 (wd1's padded K rows are 0 too)
        eps = jnp.concatenate(
            [eps, jnp.zeros((eps.shape[0], slot_l - latent_size), jnp.float32)],
            axis=-1)
    z = mu + eps * jnp.exp(0.5 * log_var)                     # (tb, slot_l) f32

    # --- decoder: Linear -> ReLU -> Linear -> ReLU -> Linear -> Sigmoid ---
    d = jnp.maximum(dense(z, wd1_ref, bd1_ref, act_dtype), 0.0)
    d = jnp.maximum(dense(d, wd2_ref, bd2_ref, act_dtype), 0.0)
    x_hat = jax.nn.sigmoid(dense(d, wd3_ref, bd3_ref, jnp.float32))  # (tb, slot_x)

    # --- 128-lane-aligned slot stores: [x_hat | mu | log_var | z], unmasked vst ---
    out_ref[:, :slot_x] = x_hat
    out_ref[:, slot_x:slot_x + slot_l] = mu
    out_ref[:, slot_x + slot_l:slot_x + 2 * slot_l] = log_var
    out_ref[:, slot_x + 2 * slot_l:] = z


def prepare_params(params, weight_dtype=jnp.bfloat16):
    """One-time weight prep: fuse the mu/var heads, zero-pad latent / output dims to
    128 lanes, cast matmul weights to the MXU dtype.  Do NOT call per forward step."""
    (w1, b1, w2, b2, wmu, bmu, wvar, bvar,
     wd1, bd1, wd2, bd2, wd3, bd3) = params
    input_size = w1.shape[0]
    latent_size = wmu.shape[1]
    slot_l = _round_up(latent_size, 128)
    slot_x = _round_up(input_size, 128)

    pad_c = lambda a, n: jnp.pad(a, ((0, 0), (0, n - a.shape[1])))
    pad_r = lambda a, n: jnp.pad(a, ((0, n - a.shape[0]), (0, 0)))

    whead = jnp.concatenate([pad_c(wmu, slot_l), pad_c(wvar, slot_l)], axis=1)
    bhead = jnp.concatenate([pad_c(bmu, slot_l), pad_c(bvar, slot_l)], axis=1)
    wd1p = pad_r(wd1, slot_l)          # zero K-rows for the padded latent lanes
    wd3p = pad_c(wd3, slot_x)
    bd3p = pad_c(bd3, slot_x)

    wc = lambda w: w.astype(weight_dtype)
    return (wc(w1), b1, wc(w2), b2, wc(whead), bhead,
            wc(wd1p), bd1, wc(wd2), bd2, wc(wd3p), bd3p)


def vae_forward_pallas(x, eps, prepared, *, tile_b=None, act_dtype=None):
    """VAE forward.  x: (B, input_size), eps: (B, latent_size) ~ N(0,1),
    prepared: output of prepare_params()."""
    B, input_size = x.shape
    latent_size = eps.shape[1]
    (w1, b1, w2, b2, whead, bhead, wd1p, bd1, wd2, bd2, wd3p, bd3p) = prepared
    hidden1 = w1.shape[1]
    hidden2 = w2.shape[1]
    slot_l = _round_up(latent_size, 128)
    slot_x = _round_up(input_size, 128)
    out_w = slot_x + 3 * slot_l

    num_cores, has_bf16_vpu = _device_info()
    if act_dtype is None:
        # bf16 activations only where the VPU has a bf16 path (v6e/v7x); f32 on v5e.
        act_dtype = w1.dtype if has_bf16_vpu else jnp.float32

    # Batch tiling: as large as practical to amortize the ~0.35us/step grid overhead
    # (VMEM is not a constraint on any generation at these layer sizes).  On v7x we
    # split into >=2 tiles so ("parallel",) shards the grid across both TensorCores.
    if tile_b is None:
        target = pl.cdiv(B, num_cores) if num_cores > 1 else B
        tile_b = max(8, min(_round_up(target, 8), 1024))
    if tile_b >= B:
        tile_b = B                      # single block covering the whole batch
    grid = (pl.cdiv(B, tile_b),)
    # Note: with a ragged last block, out-of-bounds rows compute on undefined data.
    # That is safe (rows are independent, OOB rows are masked on writeback and sliced
    # off below) -- do not "fix" by re-introducing a wrapper-side pad.

    weights = [w1, b1, w2, b2, whead, bhead, wd1p, bd1, wd2, bd2, wd3p, bd3p]

    in_specs = [
        pl.BlockSpec((tile_b, input_size), lambda i: (i, 0)),     # x
        pl.BlockSpec((tile_b, latent_size), lambda i: (i, 0)),    # eps
    ] + [
        # Grid-invariant weights (index_map always (0,0)).  At realistic VAE sizes on
        # v7x, consider pipeline_mode=pl.Buffered(1) to drop the redundant 2nd buffer.
        pl.BlockSpec(w.shape, lambda i: (0, 0)) for w in weights
    ]
    out_specs = pl.BlockSpec((tile_b, out_w), lambda i: (i, 0))
    out_shape = jax.ShapeDtypeStruct((B, out_w), jnp.float32)

    flops = 2 * B * (input_size * hidden1 + hidden1 * hidden2
                     + hidden2 * 2 * slot_l + slot_l * hidden2
                     + hidden2 * hidden1 + hidden1 * slot_x)
    bytes_accessed = (x.size * x.dtype.itemsize + eps.size * eps.dtype.itemsize
                      + sum(int(w.size) * w.dtype.itemsize for w in weights)
                      + B * out_w * 4)
    cost = pl.CostEstimate(flops=int(flops),
                           transcendentals=int(B * (slot_l + slot_x)),
                           bytes_accessed=int(bytes_accessed))

    kernel = functools.partial(_vae_fused_kernel, latent_size=latent_size,
                               slot_l=slot_l, slot_x=slot_x, act_dtype=act_dtype)

    out = pl.pallas_call(
        kernel,
        out_shape=out_shape,
        grid_spec=pl.GridSpec(grid=grid, in_specs=in_specs, out_specs=out_specs),
        compiler_params=pltpu.CompilerParams(dimension_semantics=("parallel",)),
        cost_estimate=cost,
    )(x, eps, *weights)

    # Split the lane-aligned output slots in the JAX wrapper.
    x_hat = out[:, :input_size]
    mu = out[:, slot_x:slot_x + latent_size]
    log_var = out[:, slot_x + slot_l:slot_x + slot_l + latent_size]
    z = out[:, slot_x + 2 * slot_l:slot_x + 2 * slot_l + latent_size]
    return x_hat, mu, log_var, z


def init_params(key, input_size, hidden1, hidden2, latent_size):
    """Deterministic synthetic weights. Linear weights stored as (in, out)."""
    def linear(k, fan_in, fan_out):
        kw, kb = jax.random.split(k)
        bound = 1.0 / jnp.sqrt(fan_in)
        w = jax.random.uniform(kw, (fan_in, fan_out), jnp.float32, -bound, bound)
        b = jax.random.uniform(kb, (1, fan_out), jnp.float32, -bound, bound)
        return w, b

    keys = jax.random.split(key, 7)
    w1, b1 = linear(keys[0], input_size, hidden1)
    w2, b2 = linear(keys[1], hidden1, hidden2)
    wmu, bmu = linear(keys[2], hidden2, latent_size)
    wvar, bvar = linear(keys[3], hidden2, latent_size)
    wd1, bd1 = linear(keys[4], latent_size, hidden2)
    wd2, bd2 = linear(keys[5], hidden2, hidden1)
    wd3, bd3 = linear(keys[6], hidden1, input_size)
    return (w1, b1, w2, b2, wmu, bmu, wvar, bvar, wd1, bd1, wd2, bd2, wd3, bd3)


def vae_forward_ref(x, eps, params, weight_dtype=jnp.float32, act_dtype=jnp.float32):
    """Pure-JAX reference mirroring the PyTorch forward; optionally mirrors the
    kernel's bf16-weight / bf16-activation / f32-accumulate arithmetic."""
    (w1, b1, w2, b2, wmu, bmu, wvar, bvar,
     wd1, bd1, wd2, bd2, wd3, bd3) = params

    def dense(a, w, b):
        return jnp.dot(a.astype(weight_dtype), w.astype(weight_dtype),
                       preferred_element_type=jnp.float32) + b

    h = jnp.maximum(dense(x, w1, b1), 0.0).astype(act_dtype)
    h = jnp.maximum(dense(h, w2, b2), 0.0).astype(act_dtype)
    mu = dense(h, wmu, bmu)
    log_var = dense(h, wvar, bvar)
    z = mu + eps * jnp.exp(0.5 * log_var)
    d = jnp.maximum(dense(z, wd1, bd1), 0.0).astype(act_dtype)
    d = jnp.maximum(dense(d, wd2, bd2), 0.0).astype(act_dtype)
    x_hat = jax.nn.sigmoid(dense(d, wd3, bd3))
    return x_hat, mu, log_var, z


if __name__ == "__main__":
    # Small shapes consistent with the module's flat-vector forward.
    batch = 256
    input_size = 64
    hidden1 = 128
    hidden2 = 64
    latent_size = 16

    key = jax.random.PRNGKey(0)
    k_x, k_eps, k_p = jax.random.split(key, 3)

    x = jax.random.normal(k_x, (batch, input_size), jnp.float32)
    eps = jax.random.normal(k_eps, (batch, latent_size), jnp.float32)  # torch.randn_like
    params = init_params(k_p, input_size, hidden1, hidden2, latent_size)

    weight_dtype = jnp.bfloat16
    prepared = prepare_params(params, weight_dtype=weight_dtype)   # one-time prep
    _, has_bf16_vpu = _device_info()
    act_dtype = weight_dtype if has_bf16_vpu else jnp.float32

    fwd = jax.jit(functools.partial(vae_forward_pallas, act_dtype=act_dtype))
    outs = jax.block_until_ready(fwd(x, eps, prepared))
    x_hat, mu, log_var, z = outs

    # Tight check vs a reference mirroring the kernel's mixed-precision arithmetic.
    ref_mixed = vae_forward_ref(x, eps, params,
                                weight_dtype=weight_dtype, act_dtype=act_dtype)
    for a, b in zip(outs, ref_mixed):
        err = float(jnp.max(jnp.abs(a - b)))
        assert jnp.allclose(a, b, atol=3e-3, rtol=3e-3), err

    # Loose check vs the pure-f32 forward (bf16 rounding only).
    ref_f32 = vae_forward_ref(x, eps, params)
    for a, b in zip(outs, ref_f32):
        err = float(jnp.max(jnp.abs(a - b)))
        assert jnp.allclose(a, b, atol=7.5e-2, rtol=7.5e-2), err

    print("KERNEL_OK")
</pallas_src>

<mosaic_0001>
module attributes {stable_mosaic.version = 11 : i64} {
  func.func @_vae_fused_kernel(%arg0: i32, %arg1: memref<256x64xf32, #tpu.memory_space<vmem>>, %arg2: memref<256x16xf32, #tpu.memory_space<vmem>>, %arg3: memref<64x128xbf16, #tpu.memory_space<vmem>>, %arg4: memref<1x128xf32, #tpu.memory_space<vmem>>, %arg5: memref<128x64xbf16, #tpu.memory_space<vmem>>, %arg6: memref<1x64xf32, #tpu.memory_space<vmem>>, %arg7: memref<64x256xbf16, #tpu.memory_space<vmem>>, %arg8: memref<1x256xf32, #tpu.memory_space<vmem>>, %arg9: memref<128x64xbf16, #tpu.memory_space<vmem>>, %arg10: memref<1x64xf32, #tpu.memory_space<vmem>>, %arg11: memref<64x128xbf16, #tpu.memory_space<vmem>>, %arg12: memref<1x128xf32, #tpu.memory_space<vmem>>, %arg13: memref<128x128xbf16, #tpu.memory_space<vmem>>, %arg14: memref<1x128xf32, #tpu.memory_space<vmem>>, %arg15: memref<256x512xf32, #tpu.memory_space<vmem>>) attributes {dimension_semantics = [#tpu.dimension_semantics<parallel>], iteration_bounds = array<i64: 1>, scalar_prefetch = 0 : i64, scratch_operands = 0 : i64, tpu.core_type = #tpu.core_type<tc>, window_params = [{transform_indices = @transform_0, window_bounds = array<i64: 256, 64>}, {transform_indices = @transform_1, window_bounds = array<i64: 256, 16>}, {pipeline_mode = #tpu.pipeline_mode<synchronous>, transform_indices = @transform_2, window_bounds = array<i64: 64, 128>}, {pipeline_mode = #tpu.pipeline_mode<synchronous>, transform_indices = @transform_3, window_bounds = array<i64: 1, 128>}, {pipeline_mode = #tpu.pipeline_mode<synchronous>, transform_indices = @transform_4, window_bounds = array<i64: 128, 64>}, {pipeline_mode = #tpu.pipeline_mode<synchronous>, transform_indices = @transform_5, window_bounds = array<i64: 1, 64>}, {pipeline_mode = #tpu.pipeline_mode<synchronous>, transform_indices = @transform_6, window_bounds = array<i64: 64, 256>}, {pipeline_mode = #tpu.pipeline_mode<synchronous>, transform_indices = @transform_7, window_bounds = array<i64: 1, 256>}, {pipeline_mode = #tpu.pipeline_mode<synchronous>, transform_indices = @transform_8, window_bounds = array<i64: 128, 64>}, {pipeline_mode = #tpu.pipeline_mode<synchronous>, transform_indices = @transform_9, window_bounds = array<i64: 1, 64>}, {pipeline_mode = #tpu.pipeline_mode<synchronous>, transform_indices = @transform_10, window_bounds = array<i64: 64, 128>}, {pipeline_mode = #tpu.pipeline_mode<synchronous>, transform_indices = @transform_11, window_bounds = array<i64: 1, 128>}, {pipeline_mode = #tpu.pipeline_mode<synchronous>, transform_indices = @transform_12, window_bounds = array<i64: 128, 128>}, {pipeline_mode = #tpu.pipeline_mode<synchronous>, transform_indices = @transform_13, window_bounds = array<i64: 1, 128>}, {transform_indices = @transform_14, window_bounds = array<i64: 256, 512>}]} {
    %c0 = arith.constant 0 : index
    %c0_0 = arith.constant 0 : index
    %0 = vector.load %arg1[%c0, %c0_0] : memref<256x64xf32, #tpu.memory_space<vmem>>, vector<256x64xf32>
    %1 = arith.truncf %0 : vector<256x64xf32> to vector<256x64xbf16>
    %c0_1 = arith.constant 0 : index
    %c0_2 = arith.constant 0 : index
    %2 = vector.load %arg3[%c0_1, %c0_2] : memref<64x128xbf16, #tpu.memory_space<vmem>>, vector<64x128xbf16>
    %cst = arith.constant dense<0.000000e+00> : vector<256x128xf32>
    %3 = tpu.matmul %1, %2, %cst {dimension_numbers = #tpu.dot_dimension_numbers<[1], [0], [0], [1], [0, 0, 1, 1], [], []>} : vector<256x64xbf16>, vector<64x128xbf16>, vector<256x128xf32> -> vector<256x128xf32>
    %c0_3 = arith.constant 0 : index
    %c0_4 = arith.constant 0 : index
    %4 = vector.load %arg4[%c0_3, %c0_4] : memref<1x128xf32, #tpu.memory_space<vmem>>, vector<1x128xf32>
    %5 = vector.broadcast %4 : vector<1x128xf32> to vector<256x128xf32>
    %6 = arith.addf %3, %5 : vector<256x128xf32>
    %7 = arith.truncf %6 : vector<256x128xf32> to vector<256x128xbf16>
    %cst_5 = arith.constant 0.000000e+00 : bf16
    %8 = vector.broadcast %cst_5 : bf16 to vector<256x128xbf16>
    %9 = arith.maximumf %7, %8 : vector<256x128xbf16>
    %c0_6 = arith.constant 0 : index
    %c0_7 = arith.constant 0 : index
    %10 = vector.load %arg5[%c0_6, %c0_7] : memref<128x64xbf16, #tpu.memory_space<vmem>>, vector<128x64xbf16>
    %cst_8 = arith.constant dense<0.000000e+00> : vector<256x64xf32>
    %11 = tpu.matmul %9, %10, %cst_8 {dimension_numbers = #tpu.dot_dimension_numbers<[1], [0], [0], [1], [0, 0, 1, 1], [], []>} : vector<256x128xbf16>, vector<128x64xbf16>, vector<256x64xf32> -> vector<256x64xf32>
    %c0_9 = arith.constant 0 : index
    %c0_10 = arith.constant 0 : index
    %12 = vector.load %arg6[%c0_9, %c0_10] : memref<1x64xf32, #tpu.memory_space<vmem>>, vector<1x64xf32>
    %13 = vector.broadcast %12 : vector<1x64xf32> to vector<256x64xf32>
    %14 = arith.addf %11, %13 : vector<256x64xf32>
    %15 = arith.truncf %14 : vector<256x64xf32> to vector<256x64xbf16>
    %cst_11 = arith.constant 0.000000e+00 : bf16
    %16 = vector.broadcast %cst_11 : bf16 to vector<256x64xbf16>
    %17 = arith.maximumf %15, %16 : vector<256x64xbf16>
    %c0_12 = arith.constant 0 : index
    %c0_13 = arith.constant 0 : index
    %18 = vector.load %arg7[%c0_12, %c0_13] : memref<64x256xbf16, #tpu.memory_space<vmem>>, vector<64x256xbf16>
    %cst_14 = arith.constant dense<0.000000e+00> : vector<256x256xf32>
    %19 = tpu.matmul %17, %18, %cst_14 {dimension_numbers = #tpu.dot_dimension_numbers<[1], [0], [0], [1], [0, 0, 1, 1], [], []>} : vector<256x64xbf16>, vector<64x256xbf16>, vector<256x256xf32> -> vector<256x256xf32>
    %c0_15 = arith.constant 0 : index
    %c0_16 = arith.constant 0 : index
    %20 = vector.load %arg8[%c0_15, %c0_16] : memref<1x256xf32, #tpu.memory_space<vmem>>, vector<1x256xf32>
    %21 = vector.broadcast %20 : vector<1x256xf32> to vector<256x256xf32>
    %22 = arith.addf %19, %21 : vector<256x256xf32>
    %23 = vector.extract_strided_slice %22 {offsets = [0, 0], sizes = [256, 128], strides = [1, 1]} : vector<256x256xf32> to vector<256x128xf32>
    %24 = vector.extract_strided_slice %22 {offsets = [0, 128], sizes = [256, 128], strides = [1, 1]} : vector<256x256xf32> to vector<256x128xf32>
    %c0_17 = arith.constant 0 : index
    %c0_18 = arith.constant 0 : index
    %25 = vector.load %arg2[%c0_17, %c0_18] : memref<256x16xf32, #tpu.memory_space<vmem>>, vector<256x16xf32>
    %cst_19 = arith.constant 0.000000e+00 : f32
    %26 = vector.broadcast %cst_19 : f32 to vector<256x112xf32>
    %27 = tpu.concatenate %25, %26 in 1 : vector<256x16xf32>, vector<256x112xf32> -> vector<256x128xf32>
    %cst_20 = arith.constant 5.000000e-01 : f32
    %28 = vector.broadcast %cst_20 : f32 to vector<256x128xf32>
    %29 = arith.mulf %28, %24 : vector<256x128xf32>
    %30 = math.exp %29 : vector<256x128xf32>
    %31 = arith.mulf %27, %30 : vector<256x128xf32>
    %32 = arith.addf %23, %31 : vector<256x128xf32>
    %33 = arith.truncf %32 : vector<256x128xf32> to vector<256x128xbf16>
    %c0_21 = arith.constant 0 : index
    %c0_22 = arith.constant 0 : index
    %34 = vector.load %arg9[%c0_21, %c0_22] : memref<128x64xbf16, #tpu.memory_space<vmem>>, vector<128x64xbf16>
    %cst_23 = arith.constant dense<0.000000e+00> : vector<256x64xf32>
    %35 = tpu.matmul %33, %34, %cst_23 {dimension_numbers = #tpu.dot_dimension_numbers<[1], [0], [0], [1], [0, 0, 1, 1], [], []>} : vector<256x128xbf16>, vector<128x64xbf16>, vector<256x64xf32> -> vector<256x64xf32>
    %c0_24 = arith.constant 0 : index
    %c0_25 = arith.constant 0 : index
    %36 = vector.load %arg10[%c0_24, %c0_25] : memref<1x64xf32, #tpu.memory_space<vmem>>, vector<1x64xf32>
    %37 = vector.broadcast %36 : vector<1x64xf32> to vector<256x64xf32>
    %38 = arith.addf %35, %37 : vector<256x64xf32>
    %39 = arith.truncf %38 : vector<256x64xf32> to vector<256x64xbf16>
    %cst_26 = arith.constant 0.000000e+00 : bf16
    %40 = vector.broadcast %cst_26 : bf16 to vector<256x64xbf16>
    %41 = arith.maximumf %39, %40 : vector<256x64xbf16>
    %c0_27 = arith.constant 0 : index
    %c0_28 = arith.constant 0 : index
    %42 = vector.load %arg11[%c0_27, %c0_28] : memref<64x128xbf16, #tpu.memory_space<vmem>>, vector<64x128xbf16>
    %cst_29 = arith.constant dense<0.000000e+00> : vector<256x128xf32>
    %43 = tpu.matmul %41, %42, %cst_29 {dimension_numbers = #tpu.dot_dimension_numbers<[1], [0], [0], [1], [0, 0, 1, 1], [], []>} : vector<256x64xbf16>, vector<64x128xbf16>, vector<256x128xf32> -> vector<256x128xf32>
    %c0_30 = arith.constant 0 : index
    %c0_31 = arith.constant 0 : index
    %44 = vector.load %arg12[%c0_30, %c0_31] : memref<1x128xf32, #tpu.memory_space<vmem>>, vector<1x128xf32>
    %45 = vector.broadcast %44 : vector<1x128xf32> to vector<256x128xf32>
    %46 = arith.addf %43, %45 : vector<256x128xf32>
    %47 = arith.truncf %46 : vector<256x128xf32> to vector<256x128xbf16>
    %cst_32 = arith.constant 0.000000e+00 : bf16
    %48 = vector.broadcast %cst_32 : bf16 to vector<256x128xbf16>
    %49 = arith.maximumf %47, %48 : vector<256x128xbf16>
    %c0_33 = arith.constant 0 : index
    %c0_34 = arith.constant 0 : index
    %50 = vector.load %arg13[%c0_33, %c0_34] : memref<128x128xbf16, #tpu.memory_space<vmem>>, vector<128x128xbf16>
    %cst_35 = arith.constant dense<0.000000e+00> : vector<256x128xf32>
    %51 = tpu.matmul %49, %50, %cst_35 {dimension_numbers = #tpu.dot_dimension_numbers<[1], [0], [0], [1], [0, 0, 1, 1], [], []>} : vector<256x128xbf16>, vector<128x128xbf16>, vector<256x128xf32> -> vector<256x128xf32>
    %c0_36 = arith.constant 0 : index
    %c0_37 = arith.constant 0 : index
    %52 = vector.load %arg14[%c0_36, %c0_37] : memref<1x128xf32, #tpu.memory_space<vmem>>, vector<1x128xf32>
    %53 = vector.broadcast %52 : vector<1x128xf32> to vector<256x128xf32>
    %54 = arith.addf %51, %53 : vector<256x128xf32>
    %55 = arith.negf %54 : vector<256x128xf32>
    %56 = math.exp %55 : vector<256x128xf32>
    %cst_38 = arith.constant 1.000000e+00 : f32
    %57 = vector.broadcast %cst_38 : f32 to vector<256x128xf32>
    %58 = arith.addf %57, %56 : vector<256x128xf32>
    %59 = arith.divf %57, %58 : vector<256x128xf32>
    %c0_39 = arith.constant 0 : index
    %c0_40 = arith.constant 0 : index
    %60 = vector.load %arg15[%c0_39, %c0_40] : memref<256x512xf32, #tpu.memory_space<vmem>>, vector<256x128xf32>
    tpu.vector_store %arg15[%c0_39, %c0_40], %59 {strides = array<i32>} : memref<256x512xf32, #tpu.memory_space<vmem>>, vector<256x128xf32>,
    %c0_41 = arith.constant 0 : index
    %c128 = arith.constant 128 : index
    %61 = vector.load %arg15[%c0_41, %c128] : memref<256x512xf32, #tpu.memory_space<vmem>>, vector<256x128xf32>
    tpu.vector_store %arg15[%c0_41, %c128], %23 {strides = array<i32>} : memref<256x512xf32, #tpu.memory_space<vmem>>, vector<256x128xf32>,
    %c0_42 = arith.constant 0 : index
    %c256 = arith.constant 256 : index
    %62 = vector.load %arg15[%c0_42, %c256] : memref<256x512xf32, #tpu.memory_space<vmem>>, vector<256x128xf32>
    tpu.vector_store %arg15[%c0_42, %c256], %24 {strides = array<i32>} : memref<256x512xf32, #tpu.memory_space<vmem>>, vector<256x128xf32>,
    %c0_43 = arith.constant 0 : index
    %c384 = arith.constant 384 : index
    %63 = vector.load %arg15[%c0_43, %c384] : memref<256x512xf32, #tpu.memory_space<vmem>>, vector<256x128xf32>
    tpu.vector_store %arg15[%c0_43, %c384], %32 {strides = array<i32>} : memref<256x512xf32, #tpu.memory_space<vmem>>, vector<256x128xf32>,
    return
  }
  func.func @transform_0(%arg0: i32) -> (i32, i32) {
    %c0_i32 = arith.constant 0 : i32
    %c0_i32_0 = arith.constant 0 : i32
    return %arg0, %c0_i32 : i32, i32
  }
  func.func @transform_1(%arg0: i32) -> (i32, i32) {
    %c0_i32 = arith.constant 0 : i32
    %c0_i32_0 = arith.constant 0 : i32
    return %arg0, %c0_i32 : i32, i32
  }
  func.func @transform_2(%arg0: i32) -> (i32, i32) {
    %c0_i32 = arith.constant 0 : i32
    %c0_i32_0 = arith.constant 0 : i32
    %c0_i32_1 = arith.constant 0 : i32
    return %c0_i32, %c0_i32_0 : i32, i32
  }
  func.func @transform_3(%arg0: i32) -> (i32, i32) {
    %c0_i32 = arith.constant 0 : i32
    %c0_i32_0 = arith.constant 0 : i32
    %c0_i32_1 = arith.constant 0 : i32
    return %c0_i32, %c0_i32_0 : i32, i32
  }
  func.func @transform_4(%arg0: i32) -> (i32, i32) {
    %c0_i32 = arith.constant 0 : i32
    %c0_i32_0 = arith.constant 0 : i32
    %c0_i32_1 = arith.constant 0 : i32
    return %c0_i32, %c0_i32_0 : i32, i32
  }
  func.func @transform_5(%arg0: i32) -> (i32, i32) {
    %c0_i32 = arith.constant 0 : i32
    %c0_i32_0 = arith.constant 0 : i32
    %c0_i32_1 = arith.constant 0 : i32
    return %c0_i32, %c0_i32_0 : i32, i32
  }
  func.func @transform_6(%arg0: i32) -> (i32, i32) {
    %c0_i32 = arith.constant 0 : i32
    %c0_i32_0 = arith.constant 0 : i32
    %c0_i32_1 = arith.constant 0 : i32
    return %c0_i32, %c0_i32_0 : i32, i32
  }
  func.func @transform_7(%arg0: i32) -> (i32, i32) {
    %c0_i32 = arith.constant 0 : i32
    %c0_i32_0 = arith.constant 0 : i32
    %c0_i32_1 = arith.constant 0 : i32
    return %c0_i32, %c0_i32_0 : i32, i32
  }
  func.func @transform_8(%arg0: i32) -> (i32, i32) {
    %c0_i32 = arith.constant 0 : i32
    %c0_i32_0 = arith.constant 0 : i32
    %c0_i32_1 = arith.constant 0 : i32
    return %c0_i32, %c0_i32_0 : i32, i32
  }
  func.func @transform_9(%arg0: i32) -> (i32, i32) {
    %c0_i32 = arith.constant 0 : i32
    %c0_i32_0 = arith.constant 0 : i32
    %c0_i32_1 = arith.constant 0 : i32
    return %c0_i32, %c0_i32_0 : i32, i32
  }
  func.func @transform_10(%arg0: i32) -> (i32, i32) {
    %c0_i32 = arith.constant 0 : i32
    %c0_i32_0 = arith.constant 0 : i32
    %c0_i32_1 = arith.constant 0 : i32
    return %c0_i32, %c0_i32_0 : i32, i32
  }
  func.func @transform_11(%arg0: i32) -> (i32, i32) {
    %c0_i32 = arith.constant 0 : i32
    %c0_i32_0 = arith.constant 0 : i32
    %c0_i32_1 = arith.constant 0 : i32
    return %c0_i32, %c0_i32_0 : i32, i32
  }
  func.func @transform_12(%arg0: i32) -> (i32, i32) {
    %c0_i32 = arith.constant 0 : i32
    %c0_i32_0 = arith.constant 0 : i32
    %c0_i32_1 = arith.constant 0 : i32
    return %c0_i32, %c0_i32_0 : i32, i32
  }
  func.func @transform_13(%arg0: i32) -> (i32, i32) {
    %c0_i32 = arith.constant 0 : i32
    %c0_i32_0 = arith.constant 0 : i32
    %c0_i32_1 = arith.constant 0 : i32
    return %c0_i32, %c0_i32_0 : i32, i32
  }
  func.func @transform_14(%arg0: i32) -> (i32, i32) {
    %c0_i32 = arith.constant 0 : i32
    %c0_i32_0 = arith.constant 0 : i32
    return %arg0, %c0_i32 : i32, i32
  }
}

</mosaic_0001>

<bundles_post_ra>
// kernel: vae_forward_pallas.1
= control target key start
LH: loop header
LB: loop body
LE: loop exit
PB: predicated region body
PF: predicated region fallthrough
CT: control target
= control target key end

     0   :  { %vm135_vm0 = vcmask 523264   ;;  %v2989_v60 = vmov 0   ;;  %vm974_vm1 = vcmask 130048   ;;  %s4303_s2 = inlined_call_operand.vmem [shape: bf16[64,128], index: 2, kind: input, shape index: {}]   ;;  %s4304_s0 = inlined_call_operand.vmem [shape: f32[256,64], index: 0, kind: input, shape index: {}]   ;;  %s4305_s4 = inlined_call_operand.vmem [shape: bf16[128,64], index: 4, kind: input, shape index: {}]   ;;  %s4306_s6 = inlined_call_operand.vmem [shape: bf16[64,256], index: 6, kind: input, shape index: {}]   ;;  %s4307_s3 = inlined_call_operand.vmem [shape: f32[1,128], index: 3, kind: input, shape index: {}]   ;;  %s4308_s5 = inlined_call_operand.vmem [shape: f32[1,64], index: 5, kind: input, shape index: {}]   ;;  %s4309_s8 = inlined_call_operand.vmem [shape: bf16[128,64], index: 8, kind: input, shape index: {}]   ;;  %s4310_s7 = inlined_call_operand.vmem [shape: f32[1,256], index: 7, kind: input, shape index: {}]   ;;  %s4311_s14 = inlined_call_operand.vmem [shape: f32[256,512], index: 14, kind: output, shape index: {}]   ;;  %s4312_s1 = inlined_call_operand.vmem [shape: f32[256,16], index: 1, kind: input, shape index: {}]   ;;  %s4313_s10 = inlined_call_operand.vmem [shape: bf16[64,128], index: 10, kind: input, shape index: {}]   ;;  %s4314_s12 = inlined_call_operand.vmem [shape: bf16[128,128], index: 12, kind: input, shape index: {}]   ;;  %s4315_s9 = inlined_call_operand.vmem [shape: f32[1,64], index: 9, kind: input, shape index: {}]   ;;  %s4316_s11 = inlined_call_operand.vmem [shape: f32[1,128], index: 11, kind: input, shape index: {}]   ;;  %s4317_s13 = inlined_call_operand.vmem [shape: f32[1,128], index: 13, kind: input, shape index: {}]  }
   0x1   :  { %v2753_v0 = vld [vmem:[%s4303_s2 + $0x18] sm:$0xff]   ;;  %v2754_v1 = vld [vmem:[%s4303_s2 + $0x10] sm:$0xff]   ;;  %v2755_v2 = vld [vmem:[%s4303_s2 + $0x8] sm:$0xff]  }
   0x2   :  { %2520 = vmatprep.subr.bf16.mxu0 %v2753_v0  ;;  %2744 = vmatprep.subr.bf16.mxu1 %v2753_v0  ;;  %v48_v3 = vld [vmem:[%s4304_s0] sm:$0xff]  ;;  %v49_v4 = vld [vmem:[%s4304_s0 + $0x8] sm:$0xff]  ;;  %v50_v10 = vld [vmem:[%s4304_s0 + $0x10] sm:$0xff] }
   0x3   :  { %2521 = vmatpush3.bf16.msra.mxu0 %v2753_v0  ;;  %2748 = vmatpush3.bf16.msra.mxu1 %v2753_v0  ;;  %v80_v5 = vpack.c.bf16 %v49_v4, %v48_v3  ;;  %v2756_v6 = vld [vmem:[%s4303_s2] sm:$0xff]   ;;  %v65_v8 = vld [vmem:[%s4304_s0 + $0x88] sm:$0xff]  ;;  %v51_v11 = vld [vmem:[%s4304_s0 + $0x18] sm:$0xff] }
   0x4   :  { %2522 = vmatprep.subr.bf16.mxu0 %v2754_v1  ;;  %2745 = vmatprep.subr.bf16.mxu1 %v2754_v1  ;;  %v64_v7 = vld [vmem:[%s4304_s0 + $0x80] sm:$0xff]  ;;  %v53_v13 = vld [vmem:[%s4304_s0 + $0x28] sm:$0xff]  ;;  %v66_v14 = vld [vmem:[%s4304_s0 + $0x90] sm:$0xff]  ;;  %v81_v18 = vpack.c.bf16 %v51_v11, %v50_v10 }
   0x5   :  { %2528 = vmatprep.mubr.msk.bf16.mxu0 %vm135_vm0, %v80_v5  ;;  %v88_v9 = vpack.c.bf16 %v65_v8, %v64_v7  ;;  %v52_v12 = vld [vmem:[%s4304_s0 + $0x20] sm:$0xff]  ;;  %v67_v15 = vld [vmem:[%s4304_s0 + $0x98] sm:$0xff]  ;;  %v69_v17 = vld [vmem:[%s4304_s0 + $0xa8] sm:$0xff] }
   0x6   :  { %v68_v16 = vld [vmem:[%s4304_s0 + $0xa0] sm:$0xff]  ;;  %v82_v19 = vpack.c.bf16 %v53_v13, %v52_v12  ;;  %v89_v20 = vpack.c.bf16 %v67_v15, %v66_v14  ;;  %v2757_v21 = vld [vmem:[%s4305_s4 + $0x38] sm:$0xff]   ;;  %v54_v23 = vld [vmem:[%s4304_s0 + $0x30] sm:$0xff] }
   0x7   :  { %2523 = vmatpush3.bf16.msra.mxu0 %v2754_v1  ;;  %2749 = vmatpush3.bf16.msra.mxu1 %v2754_v1  ;;  %v90_v22 = vpack.c.bf16 %v69_v17, %v68_v16  ;;  %v55_v24 = vld [vmem:[%s4304_s0 + $0x38] sm:$0xff]  ;;  %v2758_v25 = vld [vmem:[%s4305_s4 + $0x30] sm:$0xff]   ;;  %v56_v26 = vld [vmem:[%s4304_s0 + $0x40] sm:$0xff] }
   0x8   :  { %2524 = vmatprep.subr.bf16.mxu0 %v2755_v2  ;;  %2746 = vmatprep.subr.bf16.mxu1 %v2755_v2  ;;  %v57_v27 = vld [vmem:[%s4304_s0 + $0x48] sm:$0xff]  ;;  %v70_v28 = vld [vmem:[%s4304_s0 + $0xb0] sm:$0xff]  ;;  %v71_v29 = vld [vmem:[%s4304_s0 + $0xb8] sm:$0xff]  ;;  %v83_v33 = vpack.c.bf16 %v55_v24, %v54_v23 }
   0x9   :  { %2544 = vmatprep.mubr.msk.bf16.mxu1 %vm135_vm0, %v88_v9  ;;  %v72_v30 = vld [vmem:[%s4304_s0 + $0xc0] sm:$0xff]  ;;  %v73_v31 = vld [vmem:[%s4304_s0 + $0xc8] sm:$0xff]  ;;  %v84_v34 = vpack.c.bf16 %v57_v27, %v56_v26  ;;  %v91_v35 = vpack.c.bf16 %v71_v29, %v70_v28  ;;  %v58_v38 = vld [vmem:[%s4304_s0 + $0x50] sm:$0xff] }
   0xa   :  { %v2759_v32 = vld [vmem:[%s4305_s4 + $0x28] sm:$0xff]   ;;  %v92_v36 = vpack.c.bf16 %v73_v31, %v72_v30  ;;  %v2760_v37 = vld [vmem:[%s4305_s4 + $0x20] sm:$0xff]   ;;  %v59_v39 = vld [vmem:[%s4304_s0 + $0x58] sm:$0xff] }
   0xb   :  { %2525 = vmatpush3.bf16.msra.mxu0 %v2755_v2  ;;  %2750 = vmatpush3.bf16.msra.mxu1 %v2755_v2  ;;  %v60_v40 = vld [vmem:[%s4304_s0 + $0x60] sm:$0xff]  ;;  %v61_v41 = vld [vmem:[%s4304_s0 + $0x68] sm:$0xff]  ;;  %v74_v42 = vld [vmem:[%s4304_s0 + $0xd0] sm:$0xff]  ;;  %v85_v47 = vpack.c.bf16 %v59_v39, %v58_v38 }
   0xc   :  { %2526 = vmatprep.subr.bf16.mxu0 %v2756_v6  ;;  %2747 = vmatprep.subr.bf16.mxu1 %v2756_v6  ;;  %v75_v43 = vld [vmem:[%s4304_s0 + $0xd8] sm:$0xff]  ;;  %v76_v44 = vld [vmem:[%s4304_s0 + $0xe0] sm:$0xff]  ;;  %v77_v45 = vld [vmem:[%s4304_s0 + $0xe8] sm:$0xff]  ;;  %v86_v48 = vpack.c.bf16 %v61_v41, %v60_v40 }
   0xd   :  { %v2761_v46 = vld [vmem:[%s4305_s4 + $0x18] sm:$0xff]   ;;  %v93_v49 = vpack.c.bf16 %v75_v43, %v74_v42  ;;  %v94_v50 = vpack.c.bf16 %v77_v45, %v76_v44  ;;  %v62_v51 = vld [vmem:[%s4304_s0 + $0x70] sm:$0xff]  ;;  %v2763_v58 = vld [vmem:[%s4305_s4 + $0x8] sm:$0xff]  }
   0xe   :  { %v63_v52 = vld [vmem:[%s4304_s0 + $0x78] sm:$0xff]  ;;  %v78_v53 = vld [vmem:[%s4304_s0 + $0xf0] sm:$0xff]  ;;  %v2764_v59 = vld [vmem:[%s4305_s4] sm:$0xff]  }
   0xf   :  { %2527 = vmatpush3.bf16.msra.mxu0 %v2756_v6  ;;  %2751 = vmatpush3.bf16.msra.mxu1 %v2756_v6  ;;  %v79_v54 = vld [vmem:[%s4304_s0 + $0xf8] sm:$0xff]  ;;  %v87_v55 = vpack.c.bf16 %v63_v52, %v62_v51  ;;  %v2762_v57 = vld [vmem:[%s4305_s4 + $0x10] sm:$0xff]   ;;  %v2770_v63 = vld [vmem:[%s4306_s6 + $0x24] ss:$8 sps:$4 sm:$0xff]  }
  0x10   :  { %2560 = vmatprep.subr.bf16.mxu1 %v2757_v21  ;;  %v95_v56 = vpack.c.bf16 %v79_v54, %v78_v53  ;;  %v2765_v61 = vld [vmem:[%s4306_s6 + $0x30] ss:$8 sps:$4 sm:$0xff]   ;;  %v2767_v62 = vld [vmem:[%s4306_s6 + $0x34] ss:$8 sps:$4 sm:$0xff]   ;;  %v2768_v0 = vld [vmem:[%s4306_s6 + $0x20] ss:$8 sps:$4 sm:$0xff]  }
  0x11   :  { %757 = vmatprep.subr.bf16.mxu0 %v2767_v62  ;;  %v2773_v1 = vld [vmem:[%s4306_s6 + $0x14] ss:$8 sps:$4 sm:$0xff]   ;;  %v2771_v2 = vld [vmem:[%s4306_s6 + $0x10] ss:$8 sps:$4 sm:$0xff]   ;;  %v3237_v6 = vld [vmem:[%s4307_s3] ss:$0 sm:$0xff] }
  0x12   :  { %2529 = vmatmul.mubr.msk.bf16.vlgmr.msra.gmra.mxu0 %vm135_vm0, %v81_v18  ;;  %2545 = vmatmul.mubr.msk.bf16.vlgmr.msra.gmra.mxu1 %vm135_vm0, %v89_v20 }
  0x13   :  { %2532 = vmatprep.mubr.msk.bf16.mxu0 %vm135_vm0, %v82_v19  ;;  %2548 = vmatprep.mubr.msk.bf16.mxu1 %vm135_vm0, %v90_v22 }
  0x14   :  { %2561 = vmatpush3.bf16.msra.mxu1 %v2757_v21  ;;  %758 = vmatpush1.bf16.msra.mxu0 %v2765_v61 }
  0x15   :  { %2562 = vmatprep.subr.bf16.mxu1 %v2758_v25  ;;  %759 = vmatprep.subr.bf16.mxu0 %v2770_v63 }
  0x18   :  { %2563 = vmatpush3.bf16.msra.mxu1 %v2758_v25  ;;  %760 = vmatpush1.bf16.msra.mxu0 %v2768_v0 }
  0x19   :  { %2564 = vmatprep.subr.bf16.mxu1 %v2759_v32  ;;  %761 = vmatprep.subr.bf16.mxu0 %v2773_v1 }
  0x1a   :  { %2533 = vmatmul.mubr.msk.bf16.gmra.mxu0 %vm135_vm0, %v83_v33  ;;  %2549 = vmatmul.mubr.msk.bf16.gmra.mxu1 %vm135_vm0, %v91_v35 }
  0x1b   :  { %2536 = vmatprep.mubr.msk.bf16.mxu0 %vm135_vm0, %v84_v34  ;;  %2552 = vmatprep.mubr.msk.bf16.mxu1 %vm135_vm0, %v92_v36 }
  0x1c   :  { %2565 = vmatpush3.bf16.msra.mxu1 %v2759_v32  ;;  %762 = vmatpush1.bf16.msra.mxu0 %v2771_v2 }
  0x1d   :  { %2566 = vmatprep.subr.bf16.mxu1 %v2760_v37 }
  0x20   :  { %2567 = vmatpush3.bf16.msra.mxu1 %v2760_v37 }
  0x21   :  { %2568 = vmatprep.subr.bf16.mxu1 %v2761_v46 }
  0x22   :  { %2537 = vmatmul.mubr.msk.bf16.gmra.mxu0 %vm135_vm0, %v85_v47  ;;  %2553 = vmatmul.mubr.msk.bf16.gmra.mxu1 %vm135_vm0, %v93_v49 }
  0x23   :  { %2540 = vmatprep.mubr.msk.bf16.mxu0 %vm135_vm0, %v86_v48  ;;  %2556 = vmatprep.mubr.msk.bf16.mxu1 %vm135_vm0, %v94_v50 }
  0x24   :  { %2569 = vmatpush3.bf16.msra.mxu1 %v2761_v46 }
  0x25   :  { %2570 = vmatprep.subr.bf16.mxu1 %v2762_v57 }
  0x28   :  { %2571 = vmatpush3.bf16.msra.mxu1 %v2762_v57 }
  0x29   :  { %2572 = vmatprep.subr.bf16.mxu1 %v2763_v58 }
  0x2a   :  { %2541 = vmatmul.mubr.msk.bf16.gmra.mxu0 %vm135_vm0, %v87_v55  ;;  %2557 = vmatmul.mubr.msk.bf16.gmra.mxu1 %vm135_vm0, %v95_v56 }
  0x2b   :  { %781 = vmatprep.mubr.bf16.mxu0 %v2989_v60 }
  0x2c   :  { %2573 = vmatpush3.bf16.msra.mxu1 %v2763_v58 }
  0x2d   :  { %2574 = vmatprep.subr.bf16.mxu1 %v2764_v59 }
  0x30   :  { %2575 = vmatpush3.bf16.msra.mxu1 %v2764_v59 }
  0xd2   :  { %v2530_v3 = vpop.f32.mrf.mxu0  ;;  %v3232_v4 = vpop.f32.mrf.mxu1 }
  0xd3   :  { %v227_v11 = vadd.f32 %v2530_v3, %v3237_v6  ;;  %v291_v2 = vadd.f32 %v3232_v4, %v3237_v6 }
  0xd4   :  { %v218_v5 = vpop.f32.mrf.mxu0  ;;  %v282_v7 = vpop.f32.mrf.mxu1 }
  0xd5   :  { %v219_v13 = vadd.f32 %v3237_v6, %v218_v5  ;;  %v283_v53 = vadd.f32 %v3237_v6, %v282_v7 }
  0xd6   :  { %v2531_v8 = vpop.f32.mrf.mxu0  ;;  %v2547_v10 = vpop.f32.mrf.mxu1 }
  0xd7   :  { %v230_v9 = vadd.f32 %v2531_v8, %v3237_v6  ;;  %v294_v3 = vadd.f32 %v2547_v10, %v3237_v6 }
  0xd8   :  { %v221_v12 = vpop.f32.mrf.mxu0  ;;  %v285_v15 = vpop.f32.mrf.mxu1 }
  0xd9   :  { %v222_v14 = vadd.f32 %v3237_v6, %v221_v12  ;;  %v346_v16 = vpack.c.bf16 %v230_v9, %v227_v11  ;;  %v286_v54 = vadd.f32 %v3237_v6, %v285_v15 }
  0xda   :  { %v2534_v17 = vpop.f32.mrf.mxu0  ;;  %v3243_v19 = vpop.f32.mrf.mxu1 }
  0xdb   :  { %v345_v18 = vpack.c.bf16 %v222_v14, %v219_v13  ;;  %v243_v21 = vadd.f32 %v2534_v17, %v3237_v6  ;;  %v362_v23 = vmax.bf16 %v2989_v60, %v346_v16  ;;  %v353_v63 = vpack.c.bf16 %v286_v54, %v283_v53 }
  0xdc   :  { %v234_v20 = vpop.f32.mrf.mxu0  ;;  %v298_v25 = vpop.f32.mrf.mxu1  ;;  %v354_v13 = vpack.c.bf16 %v294_v3, %v291_v2  ;;  %v307_v10 = vadd.f32 %v3243_v19, %v3237_v6 }
  0xdd   :  { %v361_v22 = vmax.bf16 %v2989_v60, %v345_v18  ;;  %v235_v26 = vadd.f32 %v3237_v6, %v234_v20  ;;  %v369_v8 = vmax.bf16 %v2989_v60, %v353_v63  ;;  %v299_v9 = vadd.f32 %v3237_v6, %v298_v25 }
  0xde   :  { %v2535_v24 = vpop.f32.mrf.mxu0  ;;  %v2551_v32 = vpop.f32.mrf.mxu1  ;;  %v370_v4 = vmax.bf16 %v2989_v60, %v354_v13 }
  0xdf   :  { %v246_v27 = vadd.f32 %v2535_v24, %v3237_v6  ;;  %2576 = vmatprep.mubr.bf16.mxu1 %v361_v22  ;;  %v310_v16 = vadd.f32 %v2551_v32, %v3237_v6 }
  0xe0   :  { %v237_v28 = vpop.f32.mrf.mxu0  ;;  %2577 = vmatmul.mubr.bf16.vlgmr.msra.gmra.mxu1 %v362_v23  ;;  %v301_v39 = vpop.f32.mrf.mxu1 }
  0xe1   :  { %v348_v29 = vpack.c.bf16 %v246_v27, %v243_v21  ;;  %v238_v30 = vadd.f32 %v3237_v6, %v237_v28  ;;  %v302_v11 = vadd.f32 %v3237_v6, %v301_v39  ;;  %v356_v22 = vpack.c.bf16 %v310_v16, %v307_v10  ;;  %v2774_v39 = vld [vmem:[%s4306_s6] ss:$8 sps:$4 sm:$0xff]  }
  0xe2   :  { %v2538_v31 = vpop.f32.mrf.mxu0  ;;  %v2554_v43 = vpop.f32.mrf.mxu1 }
  0xe3   :  { %v347_v33 = vpack.c.bf16 %v238_v30, %v235_v26  ;;  %v364_v35 = vmax.bf16 %v2989_v60, %v348_v29  ;;  %v259_v36 = vadd.f32 %v2538_v31, %v3237_v6  ;;  %v355_v14 = vpack.c.bf16 %v302_v11, %v299_v9 }
  0xe4   :  { %v250_v34 = vpop.f32.mrf.mxu0  ;;  %v314_v50 = vpop.f32.mrf.mxu1  ;;  %v372_v25 = vmax.bf16 %v2989_v60, %v356_v22  ;;  %v323_v26 = vadd.f32 %v2554_v43, %v3237_v6 }
  0xe5   :  { %v363_v37 = vmax.bf16 %v2989_v60, %v347_v33  ;;  %v251_v40 = vadd.f32 %v3237_v6, %v250_v34  ;;  %v371_v17 = vmax.bf16 %v2989_v60, %v355_v14  ;;  %v315_v18 = vadd.f32 %v3237_v6, %v314_v50 }
  0xe6   :  { %v2539_v38 = vpop.f32.mrf.mxu0  ;;  %v2555_v59 = vpop.f32.mrf.mxu1 }
  0xe7   :  { %2580 = vmatprep.mubr.bf16.mxu1 %v363_v37  ;;  %v262_v41 = vadd.f32 %v2539_v38, %v3237_v6  ;;  %v326_v19 = vadd.f32 %v2555_v59, %v3237_v6  ;;  %v2776_v38 = vld [vmem:[%s4306_s6 + $0x4] ss:$8 sps:$4 sm:$0xff]  }
  0xe8   :  { %2581 = vmatmul.mubr.bf16.gmra.mxu1 %v364_v35  ;;  %v253_v42 = vpop.f32.mrf.mxu0  ;;  %v317_v5 = vpop.f32.mrf.mxu1  ;;  %763 = vmatprep.subr.bf16.mxu0 %v2776_v38 }
  0xe9   :  { %v350_v44 = vpack.c.bf16 %v262_v41, %v259_v36  ;;  %v254_v45 = vadd.f32 %v3237_v6, %v253_v42  ;;  %v318_v20 = vadd.f32 %v3237_v6, %v317_v5  ;;  %v358_v30 = vpack.c.bf16 %v326_v19, %v323_v26  ;;  %764 = vmatpush1.bf16.msra.mxu0 %v2774_v39  ;;  %v3300_v42 = vld [vmem:[%s4308_s5] ss:$0 sm:$0xff] }
  0xea   :  { %v2542_v46 = vpop.f32.mrf.mxu0  ;;  %v2558_v12 = vpop.f32.mrf.mxu1 }
  0xeb   :  { %v349_v47 = vpack.c.bf16 %v254_v45, %v251_v40  ;;  %v366_v48 = vmax.bf16 %v2989_v60, %v350_v44  ;;  %v275_v52 = vadd.f32 %v2542_v46, %v3237_v6  ;;  %v357_v23 = vpack.c.bf16 %v318_v20, %v315_v18 }
  0xec   :  { %v266_v49 = vpop.f32.mrf.mxu0  ;;  %v330_v15 = vpop.f32.mrf.mxu1  ;;  %v374_v32 = vmax.bf16 %v2989_v60, %v358_v30  ;;  %v339_v33 = vadd.f32 %v2558_v12, %v3237_v6 }
  0xed   :  { %v365_v51 = vmax.bf16 %v2989_v60, %v349_v47  ;;  %v267_v56 = vadd.f32 %v3237_v6, %v266_v49  ;;  %v373_v27 = vmax.bf16 %v2989_v60, %v357_v23  ;;  %v331_v28 = vadd.f32 %v3237_v6, %v330_v15 }
  0xee   :  { %v2543_v55 = vpop.f32.mrf.mxu0  ;;  %v2559_v21 = vpop.f32.mrf.mxu1 }
  0xef   :  { %2584 = vmatprep.mubr.bf16.mxu1 %v365_v51  ;;  %v278_v57 = vadd.f32 %v2543_v55, %v3237_v6  ;;  %v342_v34 = vadd.f32 %v2559_v21, %v3237_v6 }
  0xf0   :  { %2585 = vmatmul.mubr.bf16.gmra.mxu1 %v366_v48  ;;  %v269_v58 = vpop.f32.mrf.mxu0  ;;  %v333_v24 = vpop.f32.mrf.mxu1 }
  0xf1   :  { %v352_v61 = vpack.c.bf16 %v278_v57, %v275_v52  ;;  %v270_v62 = vadd.f32 %v3237_v6, %v269_v58  ;;  %v334_v29 = vadd.f32 %v3237_v6, %v333_v24  ;;  %v360_v36 = vpack.c.bf16 %v342_v34, %v339_v33 }
  0xf3   :  { %v351_v0 = vpack.c.bf16 %v270_v62, %v267_v56  ;;  %v368_v1 = vmax.bf16 %v2989_v60, %v352_v61  ;;  %v359_v31 = vpack.c.bf16 %v334_v29, %v331_v28  ;;  %v376_v37 = vmax.bf16 %v2989_v60, %v360_v36 }
  0xf5   :  { %v367_v7 = vmax.bf16 %v2989_v60, %v351_v0  ;;  %v375_v35 = vmax.bf16 %v2989_v60, %v359_v31 }
  0xf7   :  { %2588 = vmatprep.mubr.bf16.mxu1 %v367_v7 }
  0xf8   :  { %2589 = vmatmul.mubr.bf16.gmra.mxu1 %v368_v1 }
  0xf9   :  { %2592 = vmatprep.mubr.bf16.mxu1 %v369_v8 }
 0x100   :  { %2593 = vmatmul.mubr.bf16.gmra.mxu1 %v370_v4 }
 0x101   :  { %2596 = vmatprep.mubr.bf16.mxu1 %v371_v17 }
 0x108   :  { %2597 = vmatmul.mubr.bf16.gmra.mxu1 %v372_v25 }
 0x109   :  { %2600 = vmatprep.mubr.bf16.mxu1 %v373_v27 }
 0x110   :  { %2601 = vmatmul.mubr.bf16.gmra.mxu1 %v374_v32 }
 0x111   :  { %2604 = vmatprep.mubr.bf16.mxu1 %v375_v35 }
 0x118   :  { %2605 = vmatmul.mubr.bf16.gmra.mxu1 %v376_v37 }
 0x1a0   :  { %v2578_v40 = vpop.f32.mrf.mxu1 }
 0x1a1   :  { %v491_v52 = vadd.f32 %v2578_v40, %v3300_v42 }
 0x1a2   :  { %v482_v6 = vpop.f32.mrf.mxu1 }
 0x1a3   :  { %v483_v44 = vadd.f32 %v3300_v42, %v482_v6 }
 0x1a4   :  { %v2579_v41 = vpop.f32.mrf.mxu1 }
 0x1a5   :  { %v494_v49 = vadd.f32 %v2579_v41, %v3300_v42 }
 0x1a6   :  { %v485_v43 = vpop.f32.mrf.mxu1 }
 0x1a7   :  { %v486_v45 = vadd.f32 %v3300_v42, %v485_v43  ;;  %v610_v53 = vpack.c.bf16 %v494_v49, %v491_v52 }
 0x1a8   :  { %v2582_v46 = vpop.f32.mrf.mxu1 }
 0x1a9   :  { %v609_v47 = vpack.c.bf16 %v486_v45, %v483_v44  ;;  %v626_v55 = vmax.bf16 %v2989_v60, %v610_v53  ;;  %v507_v1 = vadd.f32 %v2582_v46, %v3300_v42  ;;  %v2777_v45 = vld [vmem:[%s4309_s8 + $0x38] sm:$0xff]   ;;  %v2779_v53 = vld [vmem:[%s4309_s8 + $0x28] sm:$0xff]  }
 0x1aa   :  { %v498_v48 = vpop.f32.mrf.mxu1  ;;  %2608 = vmatprep.subr.bf16.mxu1 %v2777_v45 }
 0x1ab   :  { %v625_v50 = vmax.bf16 %v2989_v60, %v609_v47  ;;  %v499_v58 = vadd.f32 %v3300_v42, %v498_v48  ;;  %2609 = vmatpush3.bf16.msra.mxu1 %v2777_v45  ;;  %v2778_v48 = vld [vmem:[%s4309_s8 + $0x30] sm:$0xff]  }
 0x1ac   :  { %v2583_v51 = vpop.f32.mrf.mxu1  ;;  %2610 = vmatprep.subr.bf16.mxu1 %v2778_v48 }
 0x1ad   :  { %2321 = vmatmul.mubr.msk.bf16.vlgmr.msra.gmra.mxu0 %vm135_vm0, %v625_v50  ;;  %v510_v62 = vadd.f32 %v2583_v51, %v3300_v42 }
 0x1ae   :  { %791 = vmatprep.mubr.bf16.mxu0 %v2989_v60  ;;  %v501_v54 = vpop.f32.mrf.mxu1 }
 0x1af   :  { %v502_v56 = vadd.f32 %v3300_v42, %v501_v54  ;;  %v612_v2 = vpack.c.bf16 %v510_v62, %v507_v1  ;;  %2611 = vmatpush3.bf16.msra.mxu1 %v2778_v48  ;;  %v2781_v62 = vld [vmem:[%s4309_s8 + $0x18] sm:$0xff]   ;;  %v2782_v1 = vld [vmem:[%s4309_s8 + $0x10] sm:$0xff]  }
 0x1b0   :  { %v2586_v57 = vpop.f32.mrf.mxu1  ;;  %2612 = vmatprep.subr.bf16.mxu1 %v2779_v53 }
 0x1b1   :  { %v611_v59 = vpack.c.bf16 %v502_v56, %v499_v58  ;;  %v628_v5 = vmax.bf16 %v2989_v60, %v612_v2  ;;  %v523_v13 = vadd.f32 %v2586_v57, %v3300_v42  ;;  %v2780_v56 = vld [vmem:[%s4309_s8 + $0x20] sm:$0xff]  }
 0x1b2   :  { %v514_v61 = vpop.f32.mrf.mxu1 }
 0x1b3   :  { %v627_v63 = vmax.bf16 %v2989_v60, %v611_v59  ;;  %v515_v7 = vadd.f32 %v3300_v42, %v514_v61  ;;  %2613 = vmatpush3.bf16.msra.mxu1 %v2779_v53 }
 0x1b4   :  { %v2587_v0 = vpop.f32.mrf.mxu1  ;;  %2614 = vmatprep.subr.bf16.mxu1 %v2780_v56 }
 0x1b5   :  { %2322 = vmatmul.mubr.msk.bf16.gmra.mxu0 %vm135_vm0, %v626_v55  ;;  %v526_v14 = vadd.f32 %v2587_v0, %v3300_v42 }
 0x1b6   :  { %801 = vmatprep.mubr.bf16.mxu0 %v2989_v60  ;;  %v517_v3 = vpop.f32.mrf.mxu1 }
 0x1b7   :  { %v518_v8 = vadd.f32 %v3300_v42, %v517_v3  ;;  %v614_v10 = vpack.c.bf16 %v526_v14, %v523_v13  ;;  %2615 = vmatpush3.bf16.msra.mxu1 %v2780_v56 }
 0x1b8   :  { %v2590_v9 = vpop.f32.mrf.mxu1  ;;  %2616 = vmatprep.subr.bf16.mxu1 %v2781_v62 }
 0x1b9   :  { %v613_v11 = vpack.c.bf16 %v518_v8, %v515_v7  ;;  %v630_v17 = vmax.bf16 %v2989_v60, %v614_v10  ;;  %v539_v24 = vadd.f32 %v2590_v9, %v3300_v42  ;;  %v2783_v8 = vld [vmem:[%s4309_s8 + $0x8] sm:$0xff]  }
 0x1ba   :  { %v530_v12 = vpop.f32.mrf.mxu1 }
 0x1bb   :  { %v629_v15 = vmax.bf16 %v2989_v60, %v613_v11  ;;  %v531_v18 = vadd.f32 %v3300_v42, %v530_v12  ;;  %2617 = vmatpush3.bf16.msra.mxu1 %v2781_v62  ;;  %v2784_v12 = vld [vmem:[%s4309_s8] sm:$0xff]  }
 0x1bc   :  { %v2591_v4 = vpop.f32.mrf.mxu1  ;;  %2618 = vmatprep.subr.bf16.mxu1 %v2782_v1 }
 0x1bd   :  { %2323 = vmatmul.mubr.msk.bf16.gmra.mxu0 %vm135_vm0, %v627_v63  ;;  %v542_v25 = vadd.f32 %v2591_v4, %v3300_v42 }
 0x1be   :  { %811 = vmatprep.mubr.bf16.mxu0 %v2989_v60  ;;  %v533_v16 = vpop.f32.mrf.mxu1 }
 0x1bf   :  { %v534_v20 = vadd.f32 %v3300_v42, %v533_v16  ;;  %v616_v27 = vpack.c.bf16 %v542_v25, %v539_v24  ;;  %2619 = vmatpush3.bf16.msra.mxu1 %v2782_v1  ;;  %v649_v24 = vld [vmem:[%s4310_s7] sm:$0x3] }
 0x1c0   :  { %v2594_v21 = vpop.f32.mrf.mxu1  ;;  %2620 = vmatprep.subr.bf16.mxu1 %v2783_v8 }
 0x1c1   :  { %v615_v22 = vpack.c.bf16 %v534_v20, %v531_v18  ;;  %v632_v29 = vmax.bf16 %v2989_v60, %v616_v27  ;;  %v555_v35 = vadd.f32 %v2594_v21, %v3300_v42  ;;  %v651_v21 = vlaneseq }
 0x1c2   :  { %v546_v23 = vpop.f32.mrf.mxu1 }
 0x1c3   :  { %v631_v26 = vmax.bf16 %v2989_v60, %v615_v22  ;;  %v547_v30 = vadd.f32 %v3300_v42, %v546_v23  ;;  %2621 = vmatpush3.bf16.msra.mxu1 %v2783_v8  ;;  %v652_v22 = vshrl.u32 %v651_v21, 7  ;;  %v945_v21 = vld [vmem:[%s4312_s1 + $0x18] sm:$0xff] }
 0x1c4   :  { %v2595_v19 = vpop.f32.mrf.mxu1  ;;  %2622 = vmatprep.subr.bf16.mxu1 %v2784_v12 }
 0x1c5   :  { %2324 = vmatmul.mubr.msk.bf16.gmra.mxu0 %vm135_vm0, %v628_v5  ;;  %v558_v36 = vadd.f32 %v2595_v19, %v3300_v42  ;;  %v653_v23 = vsub.s32 0, %v652_v22  ;;  %v657_v25 = vsub.s32 1, %v652_v22 }
 0x1c6   :  { %821 = vmatprep.mubr.bf16.mxu0 %v2989_v60  ;;  %v549_v28 = vpop.f32.mrf.mxu1 }
 0x1c7   :  { %v550_v31 = vadd.f32 %v3300_v42, %v549_v28  ;;  %v618_v39 = vpack.c.bf16 %v558_v36, %v555_v35  ;;  %2623 = vmatpush3.bf16.msra.mxu1 %v2784_v12 }
 0x1c8   :  { %v2598_v32 = vpop.f32.mrf.mxu1 }
 0x1c9   :  { %v617_v33 = vpack.c.bf16 %v550_v31, %v547_v30  ;;  %v634_v6 = vmax.bf16 %v2989_v60, %v618_v39  ;;  %v571_v49 = vadd.f32 %v2598_v32, %v3300_v42 }
 0x1ca   :  { %v562_v34 = vpop.f32.mrf.mxu1 }
 0x1cb   :  { %v633_v37 = vmax.bf16 %v2989_v60, %v617_v33  ;;  %v563_v41 = vadd.f32 %v3300_v42, %v562_v34 }
 0x1cc   :  { %v2599_v38 = vpop.f32.mrf.mxu1 }
 0x1cd   :  { %2325 = vmatmul.mubr.msk.bf16.gmra.mxu0 %vm135_vm0, %v629_v15  ;;  %v574_v50 = vadd.f32 %v2599_v38, %v3300_v42 }
 0x1ce   :  { %831 = vmatprep.mubr.bf16.mxu0 %v2989_v60  ;;  %v565_v40 = vpop.f32.mrf.mxu1 }
 0x1cf   :  { %v566_v43 = vadd.f32 %v3300_v42, %v565_v40  ;;  %v620_v54 = vpack.c.bf16 %v574_v50, %v571_v49 }
 0x1d0   :  { %v2602_v44 = vpop.f32.mrf.mxu1 }
 0x1d1   :  { %v619_v46 = vpack.c.bf16 %v566_v43, %v563_v41  ;;  %v636_v57 = vmax.bf16 %v2989_v60, %v620_v54  ;;  %v587_v2 = vadd.f32 %v2602_v44, %v3300_v42 }
 0x1d2   :  { %v578_v47 = vpop.f32.mrf.mxu1 }
 0x1d3   :  { %v635_v51 = vmax.bf16 %v2989_v60, %v619_v46  ;;  %v579_v58 = vadd.f32 %v3300_v42, %v578_v47 }
 0x1d4   :  { %v2603_v52 = vpop.f32.mrf.mxu1 }
 0x1d5   :  { %2326 = vmatmul.mubr.msk.bf16.gmra.mxu0 %vm135_vm0, %v630_v17  ;;  %v590_v3 = vadd.f32 %v2603_v52, %v3300_v42 }
 0x1d6   :  { %841 = vmatprep.mubr.bf16.mxu0 %v2989_v60  ;;  %v581_v55 = vpop.f32.mrf.mxu1 }
 0x1d7   :  { %v582_v59 = vadd.f32 %v3300_v42, %v581_v55  ;;  %v622_v9 = vpack.c.bf16 %v590_v3, %v587_v2  ;;  %v944_v2 = vld [vmem:[%s4312_s1 + $0x10] sm:$0xff] }
 0x1d8   :  { %v2606_v61 = vpop.f32.mrf.mxu1 }
 0x1d9   :  { %v621_v63 = vpack.c.bf16 %v582_v59, %v579_v58  ;;  %v638_v13 = vmax.bf16 %v2989_v60, %v622_v9  ;;  %v603_v10 = vadd.f32 %v2606_v61, %v3300_v42  ;;  %v943_v59 = vld [vmem:[%s4312_s1 + $0x8] sm:$0xff] }
 0x1da   :  { %v594_v0 = vpop.f32.mrf.mxu1 }
 0x1db   :  { %v637_v5 = vmax.bf16 %v2989_v60, %v621_v63  ;;  %v595_v14 = vadd.f32 %v3300_v42, %v594_v0 }
 0x1dc   :  { %v2607_v7 = vpop.f32.mrf.mxu1 }
 0x1dd   :  { %2327 = vmatmul.mubr.msk.bf16.gmra.mxu0 %vm135_vm0, %v631_v26  ;;  %v606_v16 = vadd.f32 %v2607_v7, %v3300_v42  ;;  %v3410_v26 = vrot.slane %v649_v24, %v657_v25 }
 0x1de   :  { %851 = vmatprep.mubr.bf16.mxu0 %v2989_v60  ;;  %v597_v11 = vpop.f32.mrf.mxu1 }
 0x1df   :  { %v598_v15 = vadd.f32 %v3300_v42, %v597_v11  ;;  %v624_v18 = vpack.c.bf16 %v606_v16, %v603_v10  ;;  %v3408_v42 = vrot.slane %v649_v24, %v653_v23 }
 0x1e1   :  { %v623_v4 = vpack.c.bf16 %v598_v15, %v595_v14  ;;  %v640_v20 = vmax.bf16 %v2989_v60, %v624_v18  ;;  %v3493_v14 = vld [vmem:[%s4313_s10 + $0x18] sm:$0xff]  }
 0x1e2   :  { %2656 = vmatprep.subr.bf16.mxu1 %v3493_v14 }
 0x1e3   :  { %v639_v17 = vmax.bf16 %v2989_v60, %v623_v4 }
 0x1e5   :  { %2328 = vmatmul.mubr.msk.bf16.gmra.mxu0 %vm135_vm0, %v632_v29 }
 0x1e6   :  { %861 = vmatprep.mubr.bf16.mxu0 %v2989_v60 }
 0x1ed   :  { %2329 = vmatmul.mubr.msk.bf16.gmra.mxu0 %vm135_vm0, %v633_v37 }
 0x1ee   :  { %871 = vmatprep.mubr.bf16.mxu0 %v2989_v60 }
 0x1f5   :  { %2330 = vmatmul.mubr.msk.bf16.gmra.mxu0 %vm135_vm0, %v634_v6 }
 0x1f6   :  { %881 = vmatprep.mubr.bf16.mxu0 %v2989_v60 }
 0x1fd   :  { %2331 = vmatmul.mubr.msk.bf16.gmra.mxu0 %vm135_vm0, %v635_v51  ;;  %v942_v51 = vld [vmem:[%s4312_s1] sm:$0xff] }
 0x1fe   :  { %891 = vmatprep.mubr.bf16.mxu0 %v2989_v60  ;;  %v975_v56 = vsel %vm974_vm1, %v942_v51, 0.0 }
 0x205   :  { %2332 = vmatmul.mubr.msk.bf16.gmra.mxu0 %vm135_vm0, %v636_v57 }
 0x206   :  { %901 = vmatprep.mubr.bf16.mxu0 %v2989_v60 }
 0x20d   :  { %2333 = vmatmul.mubr.msk.bf16.gmra.mxu0 %vm135_vm0, %v637_v5  ;;  %v976_v5 = vsel %vm974_vm1, %v943_v59, 0.0 }
 0x20e   :  { %911 = vmatprep.mubr.bf16.mxu0 %v2989_v60 }
 0x215   :  { %2334 = vmatmul.mubr.msk.bf16.gmra.mxu0 %vm135_vm0, %v638_v13  ;;  %v977_v13 = vsel %vm974_vm1, %v944_v2, 0.0 }
 0x216   :  { %921 = vmatprep.mubr.bf16.mxu0 %v2989_v60 }
 0x21d   :  { %2335 = vmatmul.mubr.msk.bf16.gmra.mxu0 %vm135_vm0, %v639_v17 }
 0x21e   :  { %931 = vmatprep.mubr.bf16.mxu0 %v2989_v60 }
 0x225   :  { %2336 = vmatmul.mubr.msk.bf16.gmra.mxu0 %vm135_vm0, %v640_v20 }
 0x26d   :  { %v783_v19 = vpop.f32.mrf.mxu0 }
 0x26e   :  { %v784_v27 = vadd.f32 %v783_v19, %v3408_v42 }
 0x26f   :  { %v785_v28 = vpop.f32.mrf.mxu0 }
 0x270   :  { %2183 = vst [vmem:[%s4311_s14 + $0x8] sm:$0xff] %v784_v27  ;;  %v786_v29 = vadd.f32 %v785_v28, %v3410_v26 }
 0x271   :  { %v787_v30 = vpop.f32.mrf.mxu0 }
 0x272   :  { %v1007_v31 = vmul.f32 0.5, %v786_v29  ;;  %2215 = vst [vmem:[%s4311_s14 + $0x10] sm:$0xff] %v786_v29  ;;  %v3421_v32 = vadd.f32 %v787_v30, %v3408_v42  ;;  %v978_v29 = vsel %vm974_vm1, %v945_v21, 0.0 }
 0x273   :  { %v789_v33 = vpop.f32.mrf.mxu0 }
 0x274   :  { %v1039_v34 = vmul.f32 1.442695, %v1007_v31  ;;  %2184 = vst [vmem:[%s4311_s14 + $0x28] sm:$0xff] %v3421_v32  ;;  %v790_v35 = vadd.f32 %v789_v33, %v3410_v26  ;;  %v946_v33 = vld [vmem:[%s4312_s1 + $0x20] sm:$0xff] }
 0x275   :  { %v793_v36 = vpop.f32.mrf.mxu0 }
 0x276   :  { %2797 = vpow2.f32 %v1039_v34  ;;  %v1008_v37 = vmul.f32 0.5, %v790_v35  ;;  %2216 = vst [vmem:[%s4311_s14 + $0x30] sm:$0xff] %v790_v35  ;;  %v3432_v38 = vadd.f32 %v793_v36, %v3408_v42 }
 0x277   :  { %v795_v39 = vpop.f32.mrf.mxu0 }
 0x278   :  { %v1041_v40 = vmul.f32 1.442695, %v1008_v37  ;;  %2185 = vst [vmem:[%s4311_s14 + $0x48] sm:$0xff] %v3432_v38  ;;  %v796_v6 = vadd.f32 %v795_v39, %v3410_v26 }
 0x279   :  { %v797_v41 = vpop.f32.mrf.mxu0 }
 0x27a   :  { %2799 = vpow2.f32 %v1041_v40  ;;  %v1009_v43 = vmul.f32 0.5, %v796_v6  ;;  %2217 = vst [vmem:[%s4311_s14 + $0x50] sm:$0xff] %v796_v6  ;;  %v3443_v44 = vadd.f32 %v797_v41, %v3408_v42  ;;  %v979_v40 = vsel %vm974_vm1, %v946_v33, 0.0 }
 0x27b   :  { %v799_v45 = vpop.f32.mrf.mxu0 }
 0x27c   :  { %v1043_v46 = vmul.f32 1.442695, %v1009_v43  ;;  %2186 = vst [vmem:[%s4311_s14 + $0x68] sm:$0xff] %v3443_v44  ;;  %v800_v47 = vadd.f32 %v799_v45, %v3410_v26  ;;  %v947_v45 = vld [vmem:[%s4312_s1 + $0x28] sm:$0xff] }
 0x27d   :  { %v803_v48 = vpop.f32.mrf.mxu0 }
 0x27e   :  { %2801 = vpow2.f32 %v1043_v46  ;;  %v1010_v49 = vmul.f32 0.5, %v800_v47  ;;  %2218 = vst [vmem:[%s4311_s14 + $0x70] sm:$0xff] %v800_v47  ;;  %v3454_v50 = vadd.f32 %v803_v48, %v3408_v42 }
 0x27f   :  { %v805_v52 = vpop.f32.mrf.mxu0 }
 0x280   :  { %v1045_v53 = vmul.f32 1.442695, %v1010_v49  ;;  %2187 = vst [vmem:[%s4311_s14 + $0x88] sm:$0xff] %v3454_v50  ;;  %v806_v54 = vadd.f32 %v805_v52, %v3410_v26 }
 0x281   :  { %v807_v55 = vpop.f32.mrf.mxu0 }
 0x282   :  { %2803 = vpow2.f32 %v1045_v53  ;;  %v1011_v57 = vmul.f32 0.5, %v806_v54  ;;  %2219 = vst [vmem:[%s4311_s14 + $0x90] sm:$0xff] %v806_v54  ;;  %v3469_v58 = vadd.f32 %v807_v55, %v3408_v42  ;;  %v980_v53 = vsel %vm974_vm1, %v947_v45, 0.0 }
 0x283   :  { %v2798_v61 = vpop.eup %2797  ;;  %v809_v62 = vpop.f32.mrf.mxu0 }
 0x284   :  { %v1047_v63 = vmul.f32 1.442695, %v1011_v57  ;;  %2188 = vst [vmem:[%s4311_s14 + $0xa8] sm:$0xff] %v3469_v58  ;;  %v810_v0 = vadd.f32 %v809_v62, %v3410_v26  ;;  %v1103_v1 = vmul.f32 %v2798_v61, %v975_v56  ;;  %v948_v57 = vld [vmem:[%s4312_s1 + $0x30] sm:$0xff] }
 0x285   :  { %v813_v3 = vpop.f32.mrf.mxu0 }
 0x286   :  { %2805 = vpow2.f32 %v1047_v63  ;;  %v1012_v7 = vmul.f32 0.5, %v810_v0  ;;  %2220 = vst [vmem:[%s4311_s14 + $0xb0] sm:$0xff] %v810_v0  ;;  %v3487_v8 = vadd.f32 %v813_v3, %v3408_v42  ;;  %v1135_v9 = vadd.f32 %v1103_v1, %v784_v27 }
 0x287   :  { %v2800_v11 = vpop.eup %2799  ;;  %v815_v12 = vpop.f32.mrf.mxu0  ;;  %v981_v1 = vsel %vm974_vm1, %v948_v57, 0.0 }
 0x288   :  { %v1049_v15 = vmul.f32 1.442695, %v1012_v7  ;;  %2189 = vst [vmem:[%s4311_s14 + $0xc8] sm:$0xff] %v3487_v8  ;;  %v816_v4 = vadd.f32 %v815_v12, %v3410_v26  ;;  %v1104_v10 = vmul.f32 %v2800_v11, %v976_v5  ;;  %2247 = vst [vmem:[%s4311_s14 + $0x18] sm:$0xff] %v1135_v9  ;;  %v949_v7 = vld [vmem:[%s4312_s1 + $0x38] sm:$0xff] }
 0x289   :  { %v817_v16 = vpop.f32.mrf.mxu0 }
 0x28a   :  { %2807 = vpow2.f32 %v1049_v15  ;;  %v1013_v17 = vmul.f32 0.5, %v816_v4  ;;  %2221 = vst [vmem:[%s4311_s14 + $0xd0] sm:$0xff] %v816_v4  ;;  %v3508_v18 = vadd.f32 %v817_v16, %v3408_v42  ;;  %v1136_v20 = vadd.f32 %v1104_v10, %v3421_v32 }
 0x28b   :  { %v2802_v22 = vpop.eup %2801  ;;  %v819_v23 = vpop.f32.mrf.mxu0  ;;  %v982_v4 = vsel %vm974_vm1, %v949_v7, 0.0 }
 0x28c   :  { %v1051_v24 = vmul.f32 1.442695, %v1013_v17  ;;  %2190 = vst [vmem:[%s4311_s14 + $0xe8] sm:$0xff] %v3508_v18  ;;  %v820_v25 = vadd.f32 %v819_v23, %v3410_v26  ;;  %v1167_v19 = vpack.c.bf16 %v1136_v20, %v1135_v9  ;;  %2248 = vst [vmem:[%s4311_s14 + $0x38] sm:$0xff] %v1136_v20  ;;  %v1105_v27 = vmul.f32 %v2802_v22, %v977_v13  ;;  %v950_v20 = vld [vmem:[%s4312_s1 + $0x40] sm:$0xff] }
 0x28d   :  { %v823_v28 = vpop.f32.mrf.mxu0 }
 0x28e   :  { %2809 = vpow2.f32 %v1051_v24  ;;  %v1014_v30 = vmul.f32 0.5, %v820_v25  ;;  %2222 = vst [vmem:[%s4311_s14 + $0xf0] sm:$0xff] %v820_v25  ;;  %v3527_v31 = vadd.f32 %v823_v28, %v3408_v42  ;;  %2624 = vmatprep.mubr.bf16.mxu1 %v1167_v19  ;;  %v1137_v32 = vadd.f32 %v1105_v27, %v3432_v38 }
 0x28f   :  { %v2804_v34 = vpop.eup %2803  ;;  %v825_v35 = vpop.f32.mrf.mxu0  ;;  %v983_v19 = vsel %vm974_vm1, %v950_v20, 0.0 }
 0x290   :  { %v1053_v36 = vmul.f32 1.442695, %v1014_v30  ;;  %2191 = vst [vmem:[%s4311_s14 + $0x108] sm:$0xff] %v3527_v31  ;;  %v826_v37 = vadd.f32 %v825_v35, %v3410_v26  ;;  %v1106_v39 = vmul.f32 %v2804_v34, %v978_v29  ;;  %2249 = vst [vmem:[%s4311_s14 + $0x58] sm:$0xff] %v1137_v32  ;;  %v951_v30 = vld [vmem:[%s4312_s1 + $0x48] sm:$0xff] }
 0x291   :  { %v827_v38 = vpop.f32.mrf.mxu0 }
 0x292   :  { %2811 = vpow2.f32 %v1053_v36  ;;  %v1015_v6 = vmul.f32 0.5, %v826_v37  ;;  %2223 = vst [vmem:[%s4311_s14 + $0x110] sm:$0xff] %v826_v37  ;;  %v3546_v41 = vadd.f32 %v827_v38, %v3408_v42  ;;  %v1138_v43 = vadd.f32 %v1106_v39, %v3443_v44 }
 0x293   :  { %v2806_v46 = vpop.eup %2805  ;;  %v829_v47 = vpop.f32.mrf.mxu0  ;;  %v984_v39 = vsel %vm974_vm1, %v951_v30, 0.0 }
 0x294   :  { %v1055_v48 = vmul.f32 1.442695, %v1015_v6  ;;  %2192 = vst [vmem:[%s4311_s14 + $0x128] sm:$0xff] %v3546_v41  ;;  %v830_v49 = vadd.f32 %v829_v47, %v3410_v26  ;;  %v1168_v51 = vpack.c.bf16 %v1138_v43, %v1137_v32  ;;  %2250 = vst [vmem:[%s4311_s14 + $0x78] sm:$0xff] %v1138_v43  ;;  %v1107_v44 = vmul.f32 %v2806_v46, %v979_v40  ;;  %v952_v43 = vld [vmem:[%s4312_s1 + $0x50] sm:$0xff] }
 0x295   :  { %v833_v52 = vpop.f32.mrf.mxu0 }
 0x296   :  { %2813 = vpow2.f32 %v1055_v48  ;;  %v1016_v54 = vmul.f32 0.5, %v830_v49  ;;  %2224 = vst [vmem:[%s4311_s14 + $0x130] sm:$0xff] %v830_v49  ;;  %v3565_v55 = vadd.f32 %v833_v52, %v3408_v42  ;;  %2625 = vmatmul.mubr.bf16.vlgmr.msra.gmra.mxu1 %v1168_v51  ;;  %v1139_v56 = vadd.f32 %v1107_v44, %v3454_v50 }
 0x297   :  { %v2808_v59 = vpop.eup %2807  ;;  %v835_v61 = vpop.f32.mrf.mxu0  ;;  %2657 = vmatpush3.bf16.msra.mxu1 %v3493_v14  ;;  %v985_v51 = vsel %vm974_vm1, %v952_v43, 0.0 }
 0x298   :  { %v1057_v62 = vmul.f32 1.442695, %v1016_v54  ;;  %2193 = vst [vmem:[%s4311_s14 + $0x148] sm:$0xff] %v3565_v55  ;;  %v836_v63 = vadd.f32 %v835_v61, %v3410_v26  ;;  %v1108_v0 = vmul.f32 %v2808_v59, %v980_v53  ;;  %2251 = vst [vmem:[%s4311_s14 + $0x98] sm:$0xff] %v1139_v56  ;;  %v953_v54 = vld [vmem:[%s4312_s1 + $0x58] sm:$0xff] }
 0x299   :  { %v837_v50 = vpop.f32.mrf.mxu0 }
 0x29a   :  { %2815 = vpow2.f32 %v1057_v62  ;;  %v1017_v2 = vmul.f32 0.5, %v836_v63  ;;  %2225 = vst [vmem:[%s4311_s14 + $0x150] sm:$0xff] %v836_v63  ;;  %v3585_v3 = vadd.f32 %v837_v50, %v3408_v42  ;;  %v1140_v5 = vadd.f32 %v1108_v0, %v3469_v58 }
 0x29b   :  { %v2810_v9 = vpop.eup %2809  ;;  %v839_v11 = vpop.f32.mrf.mxu0  ;;  %v986_v0 = vsel %vm974_vm1, %v953_v54, 0.0 }
 0x29c   :  { %v1059_v12 = vmul.f32 1.442695, %v1017_v2  ;;  %2194 = vst [vmem:[%s4311_s14 + $0x168] sm:$0xff] %v3585_v3  ;;  %v840_v13 = vadd.f32 %v839_v11, %v3410_v26  ;;  %v1169_v14 = vpack.c.bf16 %v1140_v5, %v1139_v56  ;;  %2252 = vst [vmem:[%s4311_s14 + $0xb8] sm:$0xff] %v1140_v5  ;;  %v1109_v58 = vmul.f32 %v2810_v9, %v981_v1  ;;  %v954_v5 = vld [vmem:[%s4312_s1 + $0x60] sm:$0xff] }
 0x29d   :  { %v843_v15 = vpop.f32.mrf.mxu0 }
 0x29e   :  { %2817 = vpow2.f32 %v1059_v12  ;;  %v1018_v10 = vmul.f32 0.5, %v840_v13  ;;  %2226 = vst [vmem:[%s4311_s14 + $0x170] sm:$0xff] %v840_v13  ;;  %v3604_v16 = vadd.f32 %v843_v15, %v3408_v42  ;;  %2628 = vmatprep.mubr.bf16.mxu1 %v1169_v14  ;;  %v1141_v17 = vadd.f32 %v1109_v58, %v3487_v8 }
 0x29f   :  { %v2812_v21 = vpop.eup %2811  ;;  %v845_v22 = vpop.f32.mrf.mxu0  ;;  %v987_v14 = vsel %vm974_vm1, %v954_v5, 0.0 }
 0x2a0   :  { %v1061_v23 = vmul.f32 1.442695, %v1018_v10  ;;  %2195 = vst [vmem:[%s4311_s14 + $0x188] sm:$0xff] %v3604_v16  ;;  %v846_v24 = vadd.f32 %v845_v22, %v3410_v26  ;;  %v1110_v25 = vmul.f32 %v2812_v21, %v982_v4  ;;  %2253 = vst [vmem:[%s4311_s14 + $0xd8] sm:$0xff] %v1141_v17  ;;  %v955_v10 = vld [vmem:[%s4312_s1 + $0x68] sm:$0xff] }
 0x2a1   :  { %v847_v8 = vpop.f32.mrf.mxu0 }
 0x2a2   :  { %2819 = vpow2.f32 %v1061_v23  ;;  %v1019_v27 = vmul.f32 0.5, %v846_v24  ;;  %2227 = vst [vmem:[%s4311_s14 + $0x190] sm:$0xff] %v846_v24  ;;  %v3623_v28 = vadd.f32 %v847_v8, %v3408_v42  ;;  %v1142_v29 = vadd.f32 %v1110_v25, %v3508_v18 }
 0x2a3   :  { %v2814_v32 = vpop.eup %2813  ;;  %v849_v33 = vpop.f32.mrf.mxu0  ;;  %v988_v25 = vsel %vm974_vm1, %v955_v10, 0.0 }
 0x2a4   :  { %v1063_v34 = vmul.f32 1.442695, %v1019_v27  ;;  %2196 = vst [vmem:[%s4311_s14 + $0x1a8] sm:$0xff] %v3623_v28  ;;  %v850_v35 = vadd.f32 %v849_v33, %v3410_v26  ;;  %v1170_v36 = vpack.c.bf16 %v1142_v29, %v1141_v17  ;;  %2254 = vst [vmem:[%s4311_s14 + $0xf8] sm:$0xff] %v1142_v29  ;;  %v1111_v18 = vmul.f32 %v2814_v32, %v983_v19  ;;  %v956_v29 = vld [vmem:[%s4312_s1 + $0x70] sm:$0xff] }
 0x2a5   :  { %v853_v37 = vpop.f32.mrf.mxu0 }
 0x2a6   :  { %2821 = vpow2.f32 %v1063_v34  ;;  %v1020_v38 = vmul.f32 0.5, %v850_v35  ;;  %2228 = vst [vmem:[%s4311_s14 + $0x1b0] sm:$0xff] %v850_v35  ;;  %v3642_v40 = vadd.f32 %v853_v37, %v3408_v42  ;;  %2629 = vmatmul.mubr.bf16.gmra.mxu1 %v1170_v36  ;;  %v1143_v6 = vadd.f32 %v1111_v18, %v3527_v31 }
 0x2a7   :  { %v2816_v45 = vpop.eup %2815  ;;  %v855_v46 = vpop.f32.mrf.mxu0  ;;  %v989_v36 = vsel %vm974_vm1, %v956_v29, 0.0 }
 0x2a8   :  { %v1065_v47 = vmul.f32 1.442695, %v1020_v38  ;;  %2197 = vst [vmem:[%s4311_s14 + $0x1c8] sm:$0xff] %v3642_v40  ;;  %v856_v48 = vadd.f32 %v855_v46, %v3410_v26  ;;  %v1112_v49 = vmul.f32 %v2816_v45, %v984_v39  ;;  %2255 = vst [vmem:[%s4311_s14 + $0x118] sm:$0xff] %v1143_v6  ;;  %v957_v38 = vld [vmem:[%s4312_s1 + $0x78] sm:$0xff] }
 0x2a9   :  { %v857_v31 = vpop.f32.mrf.mxu0 }
 0x2aa   :  { %2823 = vpow2.f32 %v1065_v47  ;;  %v1021_v44 = vmul.f32 0.5, %v856_v48  ;;  %2229 = vst [vmem:[%s4311_s14 + $0x1d0] sm:$0xff] %v856_v48  ;;  %v3661_v52 = vadd.f32 %v857_v31, %v3408_v42  ;;  %v1144_v53 = vadd.f32 %v1112_v49, %v3546_v41 }
 0x2ab   :  { %v2818_v56 = vpop.eup %2817  ;;  %v859_v57 = vpop.f32.mrf.mxu0  ;;  %v990_v49 = vsel %vm974_vm1, %v957_v38, 0.0 }
 0x2ac   :  { %v1067_v59 = vmul.f32 1.442695, %v1021_v44  ;;  %2198 = vst [vmem:[%s4311_s14 + $0x1e8] sm:$0xff] %v3661_v52  ;;  %v860_v61 = vadd.f32 %v859_v57, %v3410_v26  ;;  %v1171_v62 = vpack.c.bf16 %v1144_v53, %v1143_v6  ;;  %2256 = vst [vmem:[%s4311_s14 + $0x138] sm:$0xff] %v1144_v53  ;;  %v1113_v41 = vmul.f32 %v2818_v56, %v985_v51  ;;  %v958_v53 = vld [vmem:[%s4312_s1 + $0x80] sm:$0xff] }
 0x2ad   :  { %v863_v63 = vpop.f32.mrf.mxu0 }
 0x2ae   :  { %2825 = vpow2.f32 %v1067_v59  ;;  %v1022_v50 = vmul.f32 0.5, %v860_v61  ;;  %2230 = vst [vmem:[%s4311_s14 + $0x1f0] sm:$0xff] %v860_v61  ;;  %v3680_v1 = vadd.f32 %v863_v63, %v3408_v42  ;;  %2632 = vmatprep.mubr.bf16.mxu1 %v1171_v62  ;;  %v1145_v2 = vadd.f32 %v1113_v41, %v3565_v55 }
 0x2af   :  { %v2820_v7 = vpop.eup %2819  ;;  %v865_v9 = vpop.f32.mrf.mxu0  ;;  %v991_v62 = vsel %vm974_vm1, %v958_v53, 0.0 }
 0x2b0   :  { %v1069_v11 = vmul.f32 1.442695, %v1022_v50  ;;  %2199 = vst [vmem:[%s4311_s14 + $0x208] sm:$0xff] %v3680_v1  ;;  %v866_v12 = vadd.f32 %v865_v9, %v3410_v26  ;;  %v1114_v13 = vmul.f32 %v2820_v7, %v986_v0  ;;  %2257 = vst [vmem:[%s4311_s14 + $0x158] sm:$0xff] %v1145_v2  ;;  %v959_v50 = vld [vmem:[%s4312_s1 + $0x88] sm:$0xff] }
 0x2b1   :  { %v867_v55 = vpop.f32.mrf.mxu0 }
 0x2b2   :  { %2827 = vpow2.f32 %v1069_v11  ;;  %v1023_v58 = vmul.f32 0.5, %v866_v12  ;;  %2231 = vst [vmem:[%s4311_s14 + $0x210] sm:$0xff] %v866_v12  ;;  %v3699_v15 = vadd.f32 %v867_v55, %v3408_v42  ;;  %v1146_v4 = vadd.f32 %v1114_v13, %v3585_v3 }
 0x2b3   :  { %v2822_v17 = vpop.eup %2821  ;;  %v869_v20 = vpop.f32.mrf.mxu0  ;;  %v992_v13 = vsel %vm974_vm1, %v959_v50, 0.0  ;;  %v2786_v50 = vld [vmem:[%s4313_s10 + $0x10] sm:$0xff]  }
 0x2b4   :  { %v1071_v21 = vmul.f32 1.442695, %v1023_v58  ;;  %2200 = vst [vmem:[%s4311_s14 + $0x228] sm:$0xff] %v3699_v15  ;;  %v870_v22 = vadd.f32 %v869_v20, %v3410_v26  ;;  %v1172_v23 = vpack.c.bf16 %v1146_v4, %v1145_v2  ;;  %2258 = vst [vmem:[%s4311_s14 + $0x178] sm:$0xff] %v1146_v4  ;;  %v1115_v3 = vmul.f32 %v2822_v17, %v987_v14  ;;  %v960_v4 = vld [vmem:[%s4312_s1 + $0x90] sm:$0xff] }
 0x2b5   :  { %v873_v24 = vpop.f32.mrf.mxu0  ;;  %2658 = vmatprep.subr.bf16.mxu1 %v2786_v50 }
 0x2b6   :  { %2829 = vpow2.f32 %v1071_v21  ;;  %v1024_v8 = vmul.f32 0.5, %v870_v22  ;;  %2232 = vst [vmem:[%s4311_s14 + $0x230] sm:$0xff] %v870_v22  ;;  %v3718_v19 = vadd.f32 %v873_v24, %v3408_v42  ;;  %2633 = vmatmul.mubr.bf16.gmra.mxu1 %v1172_v23  ;;  %v1147_v27 = vadd.f32 %v1115_v3, %v3604_v16 }
 0x2b7   :  { %v2824_v30 = vpop.eup %2823  ;;  %v875_v32 = vpop.f32.mrf.mxu0  ;;  %v993_v23 = vsel %vm974_vm1, %v960_v4, 0.0  ;;  %2659 = vmatpush3.bf16.msra.mxu1 %v2786_v50  ;;  %v2787_v4 = vld [vmem:[%s4313_s10 + $0x8] sm:$0xff]   ;;  %v969_v50 = vld [vmem:[%s4312_s1 + $0xd8] sm:$0xff] }
 0x2b8   :  { %v1073_v33 = vmul.f32 1.442695, %v1024_v8  ;;  %2201 = vst [vmem:[%s4311_s14 + $0x248] sm:$0xff] %v3718_v19  ;;  %v876_v34 = vadd.f32 %v875_v32, %v3410_v26  ;;  %v1116_v35 = vmul.f32 %v2824_v30, %v988_v25  ;;  %2259 = vst [vmem:[%s4311_s14 + $0x198] sm:$0xff] %v1147_v27  ;;  %v961_v8 = vld [vmem:[%s4312_s1 + $0x98] sm:$0xff]  ;;  %2660 = vmatprep.subr.bf16.mxu1 %v2787_v4 }
 0x2b9   :  { %v877_v16 = vpop.f32.mrf.mxu0 }
 0x2ba   :  { %2831 = vpow2.f32 %v1073_v33  ;;  %v1025_v18 = vmul.f32 0.5, %v876_v34  ;;  %2233 = vst [vmem:[%s4311_s14 + $0x250] sm:$0xff] %v876_v34  ;;  %v3737_v37 = vadd.f32 %v877_v16, %v3408_v42  ;;  %v1148_v39 = vadd.f32 %v1116_v35, %v3623_v28 }
 0x2bb   :  { %v2826_v6 = vpop.eup %2825  ;;  %v879_v43 = vpop.f32.mrf.mxu0  ;;  %v994_v35 = vsel %vm974_vm1, %v961_v8, 0.0  ;;  %2661 = vmatpush3.bf16.msra.mxu1 %v2787_v4 }
 0x2bc   :  { %v1075_v45 = vmul.f32 1.442695, %v1025_v18  ;;  %2202 = vst [vmem:[%s4311_s14 + $0x268] sm:$0xff] %v3737_v37  ;;  %v880_v46 = vadd.f32 %v879_v43, %v3410_v26  ;;  %v1173_v47 = vpack.c.bf16 %v1148_v39, %v1147_v27  ;;  %2260 = vst [vmem:[%s4311_s14 + $0x1b8] sm:$0xff] %v1148_v39  ;;  %v1117_v28 = vmul.f32 %v2826_v6, %v989_v36  ;;  %v962_v39 = vld [vmem:[%s4312_s1 + $0xa0] sm:$0xff] }
 0x2bd   :  { %v883_v48 = vpop.f32.mrf.mxu0 }
 0x2be   :  { %2833 = vpow2.f32 %v1075_v45  ;;  %v1026_v31 = vmul.f32 0.5, %v880_v46  ;;  %2234 = vst [vmem:[%s4311_s14 + $0x270] sm:$0xff] %v880_v46  ;;  %v3756_v51 = vadd.f32 %v883_v48, %v3408_v42  ;;  %2636 = vmatprep.mubr.bf16.mxu1 %v1173_v47  ;;  %v1149_v44 = vadd.f32 %v1117_v28, %v3642_v40 }
 0x2bf   :  { %v2828_v54 = vpop.eup %2827  ;;  %v885_v56 = vpop.f32.mrf.mxu0  ;;  %v995_v47 = vsel %vm974_vm1, %v962_v39, 0.0 }
 0x2c0   :  { %v1077_v57 = vmul.f32 1.442695, %v1026_v31  ;;  %2203 = vst [vmem:[%s4311_s14 + $0x288] sm:$0xff] %v3756_v51  ;;  %v886_v59 = vadd.f32 %v885_v56, %v3410_v26  ;;  %v1118_v61 = vmul.f32 %v2828_v54, %v990_v49  ;;  %2261 = vst [vmem:[%s4311_s14 + $0x1d8] sm:$0xff] %v1149_v44  ;;  %v963_v31 = vld [vmem:[%s4312_s1 + $0xa8] sm:$0xff] }
 0x2c1   :  { %v887_v40 = vpop.f32.mrf.mxu0 }
 0x2c2   :  { %2835 = vpow2.f32 %v1077_v57  ;;  %v1027_v41 = vmul.f32 0.5, %v886_v59  ;;  %2235 = vst [vmem:[%s4311_s14 + $0x290] sm:$0xff] %v886_v59  ;;  %v3775_v63 = vadd.f32 %v887_v40, %v3408_v42  ;;  %v1150_v0 = vadd.f32 %v1118_v61, %v3661_v52 }
 0x2c3   :  { %v2830_v2 = vpop.eup %2829  ;;  %v889_v5 = vpop.f32.mrf.mxu0  ;;  %v996_v61 = vsel %vm974_vm1, %v963_v31, 0.0 }
 0x2c4   :  { %v1079_v7 = vmul.f32 1.442695, %v1027_v41  ;;  %2204 = vst [vmem:[%s4311_s14 + $0x2a8] sm:$0xff] %v3775_v63  ;;  %v890_v9 = vadd.f32 %v889_v5, %v3410_v26  ;;  %v1174_v11 = vpack.c.bf16 %v1150_v0, %v1149_v44  ;;  %2262 = vst [vmem:[%s4311_s14 + $0x1f8] sm:$0xff] %v1150_v0  ;;  %v1119_v52 = vmul.f32 %v2830_v2, %v991_v62  ;;  %v964_v0 = vld [vmem:[%s4312_s1 + $0xb0] sm:$0xff] }
 0x2c5   :  { %v893_v12 = vpop.f32.mrf.mxu0 }
 0x2c6   :  { %2837 = vpow2.f32 %v1079_v7  ;;  %v1028_v55 = vmul.f32 0.5, %v890_v9  ;;  %2236 = vst [vmem:[%s4311_s14 + $0x2b0] sm:$0xff] %v890_v9  ;;  %v3794_v14 = vadd.f32 %v893_v12, %v3408_v42  ;;  %2637 = vmatmul.mubr.bf16.gmra.mxu1 %v1174_v11  ;;  %v1151_v58 = vadd.f32 %v1119_v52, %v3680_v1 }
 0x2c7   :  { %v2832_v10 = vpop.eup %2831  ;;  %v895_v17 = vpop.f32.mrf.mxu0  ;;  %v997_v52 = vsel %vm974_vm1, %v964_v0, 0.0 }
 0x2c8   :  { %v1081_v20 = vmul.f32 1.442695, %v1028_v55  ;;  %2205 = vst [vmem:[%s4311_s14 + $0x2c8] sm:$0xff] %v3794_v14  ;;  %v896_v21 = vadd.f32 %v895_v17, %v3410_v26  ;;  %v1120_v22 = vmul.f32 %v2832_v10, %v992_v13  ;;  %2263 = vst [vmem:[%s4311_s14 + $0x218] sm:$0xff] %v1151_v58 }
 0x2c9   :  { %v897_v1 = vpop.f32.mrf.mxu0 }
 0x2ca   :  { %2839 = vpow2.f32 %v1081_v20  ;;  %v1029_v3 = vmul.f32 0.5, %v896_v21  ;;  %2237 = vst [vmem:[%s4311_s14 + $0x2d0] sm:$0xff] %v896_v21  ;;  %v3813_v24 = vadd.f32 %v897_v1, %v3408_v42  ;;  %v1152_v25 = vadd.f32 %v1120_v22, %v3699_v15 }
 0x2cb   :  { %v2834_v27 = vpop.eup %2833  ;;  %v899_v29 = vpop.f32.mrf.mxu0 }
 0x2cc   :  { %v1083_v30 = vmul.f32 1.442695, %v1029_v3  ;;  %2206 = vst [vmem:[%s4311_s14 + $0x2e8] sm:$0xff] %v3813_v24  ;;  %v900_v32 = vadd.f32 %v899_v29, %v3410_v26  ;;  %v1175_v33 = vpack.c.bf16 %v1152_v25, %v1151_v58  ;;  %2264 = vst [vmem:[%s4311_s14 + $0x238] sm:$0xff] %v1152_v25  ;;  %v1121_v15 = vmul.f32 %v2834_v27, %v993_v23  ;;  %v965_v58 = vld [vmem:[%s4312_s1 + $0xb8] sm:$0xff]  ;;  %v966_v27 = vld [vmem:[%s4312_s1 + $0xc0] sm:$0xff] }
 0x2cd   :  { %v903_v34 = vpop.f32.mrf.mxu0  ;;  %v998_v23 = vsel %vm974_vm1, %v965_v58, 0.0  ;;  %v2788_v29 = vld [vmem:[%s4313_s10] sm:$0xff]  }
 0x2ce   :  { %2841 = vpow2.f32 %v1083_v30  ;;  %v1030_v16 = vmul.f32 0.5, %v900_v32  ;;  %2238 = vst [vmem:[%s4311_s14 + $0x2f0] sm:$0xff] %v900_v32  ;;  %v3832_v36 = vadd.f32 %v903_v34, %v3408_v42  ;;  %2640 = vmatprep.mubr.bf16.mxu1 %v1175_v33  ;;  %v1153_v18 = vadd.f32 %v1121_v15, %v3718_v19  ;;  %2662 = vmatprep.subr.bf16.mxu1 %v2788_v29 }
 0x2cf   :  { %v2836_v38 = vpop.eup %2835  ;;  %v905_v6 = vpop.f32.mrf.mxu0  ;;  %2663 = vmatpush3.bf16.msra.mxu1 %v2788_v29 }
 0x2d0   :  { %v1085_v43 = vmul.f32 1.442695, %v1030_v16  ;;  %2207 = vst [vmem:[%s4311_s14 + $0x308] sm:$0xff] %v3832_v36  ;;  %v906_v45 = vadd.f32 %v905_v6, %v3410_v26  ;;  %v1122_v46 = vmul.f32 %v2836_v38, %v994_v35  ;;  %2265 = vst [vmem:[%s4311_s14 + $0x258] sm:$0xff] %v1153_v18  ;;  %v999_v35 = vsel %vm974_vm1, %v966_v27, 0.0  ;;  %v967_v38 = vld [vmem:[%s4312_s1 + $0xc8] sm:$0xff] }
 0x2d1   :  { %v907_v19 = vpop.f32.mrf.mxu0  ;;  %v973_v27 = vld [vmem:[%s4312_s1 + $0xf8] sm:$0xff] }
 0x2d2   :  { %2843 = vpow2.f32 %v1085_v43  ;;  %v1031_v28 = vmul.f32 0.5, %v906_v45  ;;  %2239 = vst [vmem:[%s4311_s14 + $0x310] sm:$0xff] %v906_v45  ;;  %v3851_v48 = vadd.f32 %v907_v19, %v3408_v42  ;;  %v1154_v49 = vadd.f32 %v1122_v46, %v3737_v37 }
 0x2d3   :  { %v2838_v44 = vpop.eup %2837  ;;  %v909_v53 = vpop.f32.mrf.mxu0 }
 0x2d4   :  { %v1087_v54 = vmul.f32 1.442695, %v1031_v28  ;;  %2208 = vst [vmem:[%s4311_s14 + $0x328] sm:$0xff] %v3851_v48  ;;  %v910_v56 = vadd.f32 %v909_v53, %v3410_v26  ;;  %v1176_v57 = vpack.c.bf16 %v1154_v49, %v1153_v18  ;;  %2266 = vst [vmem:[%s4311_s14 + $0x278] sm:$0xff] %v1154_v49  ;;  %v1123_v37 = vmul.f32 %v2838_v44, %v995_v47  ;;  %v968_v53 = vld [vmem:[%s4312_s1 + $0xd0] sm:$0xff] }
 0x2d5   :  { %v913_v59 = vpop.f32.mrf.mxu0  ;;  %v1000_v28 = vsel %vm974_vm1, %v967_v38, 0.0  ;;  %v4033_v38 = vld [vmem:[%s4315_s9] ss:$0 sm:$0xff] }
 0x2d6   :  { %2845 = vpow2.f32 %v1087_v54  ;;  %v1032_v40 = vmul.f32 0.5, %v910_v56  ;;  %2240 = vst [vmem:[%s4311_s14 + $0x330] sm:$0xff] %v910_v56  ;;  %v3870_v62 = vadd.f32 %v913_v59, %v3408_v42  ;;  %2641 = vmatmul.mubr.bf16.gmra.mxu1 %v1176_v57  ;;  %v1155_v41 = vadd.f32 %v1123_v37, %v3756_v51 }
 0x2d7   :  { %v2840_v2 = vpop.eup %2839  ;;  %v915_v5 = vpop.f32.mrf.mxu0 }
 0x2d8   :  { %v1089_v7 = vmul.f32 1.442695, %v1032_v40  ;;  %2209 = vst [vmem:[%s4311_s14 + $0x348] sm:$0xff] %v3870_v62  ;;  %v916_v9 = vadd.f32 %v915_v5, %v3410_v26  ;;  %v1124_v11 = vmul.f32 %v2840_v2, %v996_v61  ;;  %2267 = vst [vmem:[%s4311_s14 + $0x298] sm:$0xff] %v1155_v41 }
 0x2d9   :  { %v917_v51 = vpop.f32.mrf.mxu0 }
 0x2da   :  { %2847 = vpow2.f32 %v1089_v7  ;;  %v1033_v12 = vmul.f32 0.5, %v916_v9  ;;  %2241 = vst [vmem:[%s4311_s14 + $0x350] sm:$0xff] %v916_v9  ;;  %v3892_v13 = vadd.f32 %v917_v51, %v3408_v42  ;;  %v1156_v55 = vadd.f32 %v1124_v11, %v3775_v63 }
 0x2db   :  { %v2842_v10 = vpop.eup %2841  ;;  %v919_v17 = vpop.f32.mrf.mxu0 }
 0x2dc   :  { %v1091_v20 = vmul.f32 1.442695, %v1033_v12  ;;  %2210 = vst [vmem:[%s4311_s14 + $0x368] sm:$0xff] %v3892_v13  ;;  %v920_v21 = vadd.f32 %v919_v17, %v3410_v26  ;;  %v1177_v22 = vpack.c.bf16 %v1156_v55, %v1155_v41  ;;  %2268 = vst [vmem:[%s4311_s14 + $0x2b8] sm:$0xff] %v1156_v55  ;;  %v1125_v63 = vmul.f32 %v2842_v10, %v997_v52 }
 0x2dd   :  { %v923_v1 = vpop.f32.mrf.mxu0 }
 0x2de   :  { %2849 = vpow2.f32 %v1091_v20  ;;  %v1034_v3 = vmul.f32 0.5, %v920_v21  ;;  %2242 = vst [vmem:[%s4311_s14 + $0x370] sm:$0xff] %v920_v21  ;;  %v3914_v25 = vadd.f32 %v923_v1, %v3408_v42  ;;  %2644 = vmatprep.mubr.bf16.mxu1 %v1177_v22  ;;  %v1157_v8 = vadd.f32 %v1125_v63, %v3794_v14 }
 0x2df   :  { %v2844_v30 = vpop.eup %2843  ;;  %v925_v32 = vpop.f32.mrf.mxu0 }
 0x2e0   :  { %v1093_v33 = vmul.f32 1.442695, %v1034_v3  ;;  %2211 = vst [vmem:[%s4311_s14 + $0x388] sm:$0xff] %v3914_v25  ;;  %v926_v15 = vadd.f32 %v925_v32, %v3410_v26  ;;  %v1126_v34 = vmul.f32 %v2844_v30, %v998_v23  ;;  %2269 = vst [vmem:[%s4311_s14 + $0x2d8] sm:$0xff] %v1157_v8  ;;  %v1006_v32 = vsel %vm974_vm1, %v973_v27, 0.0 }
 0x2e1   :  { %v927_v14 = vpop.f32.mrf.mxu0 }
 0x2e2   :  { %2851 = vpow2.f32 %v1093_v33  ;;  %v1035_v16 = vmul.f32 0.5, %v926_v15  ;;  %2243 = vst [vmem:[%s4311_s14 + $0x390] sm:$0xff] %v926_v15  ;;  %v3936_v18 = vadd.f32 %v927_v14, %v3408_v42  ;;  %v1158_v39 = vadd.f32 %v1126_v34, %v3813_v24 }
 0x2e3   :  { %v2846_v6 = vpop.eup %2845  ;;  %v929_v43 = vpop.f32.mrf.mxu0 }
 0x2e4   :  { %v1095_v45 = vmul.f32 1.442695, %v1035_v16  ;;  %2212 = vst [vmem:[%s4311_s14 + $0x3a8] sm:$0xff] %v3936_v18  ;;  %v930_v46 = vadd.f32 %v929_v43, %v3410_v26  ;;  %v1178_v19 = vpack.c.bf16 %v1158_v39, %v1157_v8  ;;  %2270 = vst [vmem:[%s4311_s14 + $0x2f8] sm:$0xff] %v1158_v39  ;;  %v1127_v24 = vmul.f32 %v2846_v6, %v999_v35  ;;  %v2789_v16 = vld [vmem:[%s4314_s12 + $0x38] sm:$0xff]   ;;  %v2790_v39 = vld [vmem:[%s4314_s12 + $0x30] sm:$0xff]  }
 0x2e5   :  { %v933_v47 = vpop.f32.mrf.mxu0  ;;  %2696 = vmatprep.subr.bf16.mxu0 %v2789_v16  ;;  %v2791_v43 = vld [vmem:[%s4314_s12 + $0x28] sm:$0xff]  }
 0x2e6   :  { %2853 = vpow2.f32 %v1095_v45  ;;  %v1036_v49 = vmul.f32 0.5, %v930_v46  ;;  %2244 = vst [vmem:[%s4311_s14 + $0x3b0] sm:$0xff] %v930_v46  ;;  %v934_v31 = vadd.f32 %v933_v47, %v3408_v42  ;;  %2645 = vmatmul.mubr.bf16.gmra.mxu1 %v1178_v19  ;;  %v1159_v44 = vadd.f32 %v1127_v24, %v3832_v36  ;;  %2697 = vmatpush3.bf16.msra.mxu0 %v2789_v16 }
 0x2e7   :  { %v2848_v54 = vpop.eup %2847  ;;  %v935_v56 = vpop.f32.mrf.mxu0  ;;  %v1001_v36 = vsel %vm974_vm1, %v968_v53, 0.0  ;;  %2698 = vmatprep.subr.bf16.mxu0 %v2790_v39 }
 0x2e8   :  { %v1097_v57 = vmul.f32 1.442695, %v1036_v49  ;;  %2213 = vst [vmem:[%s4311_s14 + $0x3c8] sm:$0xff] %v934_v31  ;;  %v936_v37 = vadd.f32 %v935_v56, %v3410_v26  ;;  %v1128_v59 = vmul.f32 %v2848_v54, %v1000_v28  ;;  %2271 = vst [vmem:[%s4311_s14 + $0x318] sm:$0xff] %v1159_v44  ;;  %v2792_v49 = vld [vmem:[%s4314_s12 + $0x20] sm:$0xff]   ;;  %v2793_v54 = vld [vmem:[%s4314_s12 + $0x18] sm:$0xff]  }
 0x2e9   :  { %v937_v61 = vpop.f32.mrf.mxu0 }
 0x2ea   :  { %2855 = vpow2.f32 %v1097_v57  ;;  %v1037_v40 = vmul.f32 0.5, %v936_v37  ;;  %2245 = vst [vmem:[%s4311_s14 + $0x3d0] sm:$0xff] %v936_v37  ;;  %v938_v41 = vadd.f32 %v937_v61, %v3408_v42  ;;  %v1160_v0 = vadd.f32 %v1128_v59, %v3851_v48  ;;  %2699 = vmatpush3.bf16.msra.mxu0 %v2790_v39 }
 0x2eb   :  { %v2850_v2 = vpop.eup %2849  ;;  %v939_v5 = vpop.f32.mrf.mxu0  ;;  %v1002_v48 = vsel %vm974_vm1, %v969_v50, 0.0  ;;  %2700 = vmatprep.subr.bf16.mxu0 %v2791_v43 }
 0x2ec   :  { %v1099_v7 = vmul.f32 1.442695, %v1037_v40  ;;  %2214 = vst [vmem:[%s4311_s14 + $0x3e8] sm:$0xff] %v938_v41  ;;  %v940_v9 = vadd.f32 %v939_v5, %v3410_v26  ;;  %v1179_v11 = vpack.c.bf16 %v1160_v0, %v1159_v44  ;;  %2272 = vst [vmem:[%s4311_s14 + $0x338] sm:$0xff] %v1160_v0  ;;  %v1129_v42 = vmul.f32 %v2850_v2, %v1001_v36  ;;  %v970_v26 = vld [vmem:[%s4312_s1 + $0xe0] sm:$0xff] }
 0x2ed   :  { %v1003_v4 = vsel %vm974_vm1, %v970_v26, 0.0 }
 0x2ee   :  { %2857 = vpow2.f32 %v1099_v7  ;;  %v1038_v51 = vmul.f32 0.5, %v940_v9  ;;  %2246 = vst [vmem:[%s4311_s14 + $0x3f0] sm:$0xff] %v940_v9  ;;  %2648 = vmatprep.mubr.bf16.mxu1 %v1179_v11  ;;  %v1161_v52 = vadd.f32 %v1129_v42, %v3870_v62  ;;  %v971_v62 = vld [vmem:[%s4312_s1 + $0xe8] sm:$0xff]  ;;  %2701 = vmatpush3.bf16.msra.mxu0 %v2791_v43 }
 0x2ef   :  { %v2852_v12 = vpop.eup %2851  ;;  %v1004_v22 = vsel %vm974_vm1, %v971_v62, 0.0  ;;  %2702 = vmatprep.subr.bf16.mxu0 %v2792_v49 }
 0x2f0   :  { %v1101_v55 = vmul.f32 1.442695, %v1038_v51  ;;  %v1130_v58 = vmul.f32 %v2852_v12, %v1002_v48  ;;  %2273 = vst [vmem:[%s4311_s14 + $0x358] sm:$0xff] %v1161_v52 }
 0x2f2   :  { %2859 = vpow2.f32 %v1101_v55  ;;  %v1162_v10 = vadd.f32 %v1130_v58, %v3892_v13  ;;  %v972_v13 = vld [vmem:[%s4312_s1 + $0xf0] sm:$0xff]  ;;  %2703 = vmatpush3.bf16.msra.mxu0 %v2792_v49  ;;  %v2796_v49 = vld [vmem:[%s4314_s12] sm:$0xff]  }
 0x2f3   :  { %v2854_v17 = vpop.eup %2853  ;;  %v1005_v3 = vsel %vm974_vm1, %v972_v13, 0.0  ;;  %2704 = vmatprep.subr.bf16.mxu0 %v2793_v54 }
 0x2f4   :  { %v1180_v20 = vpack.c.bf16 %v1162_v10, %v1161_v52  ;;  %2274 = vst [vmem:[%s4311_s14 + $0x378] sm:$0xff] %v1162_v10  ;;  %v1131_v21 = vmul.f32 %v2854_v17, %v1003_v4 }
 0x2f6   :  { %2649 = vmatmul.mubr.bf16.gmra.mxu1 %v1180_v20  ;;  %v1163_v63 = vadd.f32 %v1131_v21, %v3914_v25  ;;  %2705 = vmatpush3.bf16.msra.mxu0 %v2793_v54 }
 0x2f7   :  { %v2856_v1 = vpop.eup %2855 }
 0x2f8   :  { %v1132_v23 = vmul.f32 %v2856_v1, %v1004_v22  ;;  %2275 = vst [vmem:[%s4311_s14 + $0x398] sm:$0xff] %v1163_v63 }
 0x2fa   :  { %v1164_v8 = vadd.f32 %v1132_v23, %v3936_v18 }
 0x2fb   :  { %v2858_v29 = vpop.eup %2857 }
 0x2fc   :  { %v1181_v25 = vpack.c.bf16 %v1164_v8, %v1163_v63  ;;  %2276 = vst [vmem:[%s4311_s14 + $0x3b8] sm:$0xff] %v1164_v8  ;;  %v1133_v30 = vmul.f32 %v2858_v29, %v1005_v3 }
 0x2fe   :  { %2652 = vmatprep.mubr.bf16.mxu1 %v1181_v25  ;;  %v1165_v33 = vadd.f32 %v1133_v30, %v934_v31 }
 0x2ff   :  { %v2860_v15 = vpop.eup %2859 }
 0x300   :  { %v1134_v34 = vmul.f32 %v2860_v15, %v1006_v32  ;;  %2277 = vst [vmem:[%s4311_s14 + $0x3d8] sm:$0xff] %v1165_v33 }
 0x302   :  { %v1166_v14 = vadd.f32 %v1134_v34, %v938_v41 }
 0x304   :  { %v1182_v35 = vpack.c.bf16 %v1166_v14, %v1165_v33  ;;  %2278 = vst [vmem:[%s4311_s14 + $0x3f8] sm:$0xff] %v1166_v14 }
 0x306   :  { %2653 = vmatmul.mubr.bf16.gmra.mxu1 %v1182_v35 }
 0x356   :  { %v2626_v18 = vpop.f32.mrf.mxu1 }
 0x357   :  { %v1297_v19 = vadd.f32 %v2626_v18, %v4033_v38 }
 0x358   :  { %v1288_v6 = vpop.f32.mrf.mxu1 }
 0x359   :  { %v1289_v47 = vadd.f32 %v4033_v38, %v1288_v6  ;;  %v2794_v6 = vld [vmem:[%s4314_s12 + $0x10] sm:$0xff]  }
 0x35a   :  { %v2627_v45 = vpop.f32.mrf.mxu1  ;;  %2706 = vmatprep.subr.bf16.mxu0 %v2794_v6 }
 0x35b   :  { %v1300_v46 = vadd.f32 %v2627_v45, %v4033_v38  ;;  %2707 = vmatpush3.bf16.msra.mxu0 %v2794_v6 }
 0x35c   :  { %v1291_v24 = vpop.f32.mrf.mxu1 }
 0x35d   :  { %v1292_v28 = vadd.f32 %v4033_v38, %v1291_v24  ;;  %v1416_v31 = vpack.c.bf16 %v1300_v46, %v1297_v19  ;;  %v2795_v46 = vld [vmem:[%s4314_s12 + $0x8] sm:$0xff]  }
 0x35e   :  { %2708 = vmatprep.subr.bf16.mxu0 %v2795_v46 }
 0x35f   :  { %v1415_v44 = vpack.c.bf16 %v1292_v28, %v1289_v47  ;;  %v1432_v56 = vmax.bf16 %v2989_v60, %v1416_v31  ;;  %2709 = vmatpush3.bf16.msra.mxu0 %v2795_v46 }
 0x360   :  { %2710 = vmatprep.subr.bf16.mxu0 %v2796_v49 }
 0x361   :  { %v1431_v53 = vmax.bf16 %v2989_v60, %v1415_v44 }
 0x363   :  { %2664 = vmatprep.mubr.msk.bf16.mxu1 %vm135_vm0, %v1431_v53  ;;  %2711 = vmatpush3.bf16.msra.mxu0 %v2796_v49 }
 0x364   :  { %2665 = vmatmul.mubr.msk.bf16.vlgmr.msra.gmra.mxu1 %vm135_vm0, %v1432_v56 }
 0x366   :  { %v2630_v57 = vpop.f32.mrf.mxu1 }
 0x367   :  { %v1313_v36 = vadd.f32 %v2630_v57, %v4033_v38 }
 0x368   :  { %v1304_v37 = vpop.f32.mrf.mxu1 }
 0x369   :  { %v1305_v41 = vadd.f32 %v4033_v38, %v1304_v37 }
 0x36a   :  { %v2631_v59 = vpop.f32.mrf.mxu1 }
 0x36b   :  { %v1316_v61 = vadd.f32 %v2631_v59, %v4033_v38 }
 0x36c   :  { %v1307_v40 = vpop.f32.mrf.mxu1 }
 0x36d   :  { %v1308_v0 = vadd.f32 %v4033_v38, %v1307_v40  ;;  %v1418_v50 = vpack.c.bf16 %v1316_v61, %v1313_v36 }
 0x36f   :  { %v1417_v2 = vpack.c.bf16 %v1308_v0, %v1305_v41  ;;  %v1434_v7 = vmax.bf16 %v2989_v60, %v1418_v50 }
 0x371   :  { %v1433_v5 = vmax.bf16 %v2989_v60, %v1417_v2 }
 0x373   :  { %2668 = vmatprep.mubr.msk.bf16.mxu1 %vm135_vm0, %v1433_v5 }
 0x374   :  { %2669 = vmatmul.mubr.msk.bf16.gmra.mxu1 %vm135_vm0, %v1434_v7 }
 0x376   :  { %v2634_v9 = vpop.f32.mrf.mxu1 }
 0x377   :  { %v1329_v51 = vadd.f32 %v2634_v9, %v4033_v38 }
 0x378   :  { %v1320_v11 = vpop.f32.mrf.mxu1 }
 0x379   :  { %v1321_v26 = vadd.f32 %v4033_v38, %v1320_v11 }
 0x37a   :  { %v2635_v42 = vpop.f32.mrf.mxu1 }
 0x37b   :  { %v1332_v48 = vadd.f32 %v2635_v42, %v4033_v38 }
 0x37c   :  { %v1323_v52 = vpop.f32.mrf.mxu1 }
 0x37d   :  { %v1324_v12 = vadd.f32 %v4033_v38, %v1323_v52  ;;  %v1420_v55 = vpack.c.bf16 %v1332_v48, %v1329_v51 }
 0x37f   :  { %v1419_v58 = vpack.c.bf16 %v1324_v12, %v1321_v26  ;;  %v1436_v10 = vmax.bf16 %v2989_v60, %v1420_v55 }
 0x381   :  { %v1435_v4 = vmax.bf16 %v2989_v60, %v1419_v58 }
 0x383   :  { %2672 = vmatprep.mubr.msk.bf16.mxu1 %vm135_vm0, %v1435_v4 }
 0x384   :  { %2673 = vmatmul.mubr.msk.bf16.gmra.mxu1 %vm135_vm0, %v1436_v10 }
 0x386   :  { %v2638_v62 = vpop.f32.mrf.mxu1 }
 0x387   :  { %v1345_v22 = vadd.f32 %v2638_v62, %v4033_v38 }
 0x388   :  { %v1336_v17 = vpop.f32.mrf.mxu1 }
 0x389   :  { %v1337_v13 = vadd.f32 %v4033_v38, %v1336_v17 }
 0x38a   :  { %v2639_v20 = vpop.f32.mrf.mxu1 }
 0x38b   :  { %v1348_v21 = vadd.f32 %v2639_v20, %v4033_v38 }
 0x38c   :  { %v1339_v63 = vpop.f32.mrf.mxu1 }
 0x38d   :  { %v1340_v1 = vadd.f32 %v4033_v38, %v1339_v63  ;;  %v1422_v23 = vpack.c.bf16 %v1348_v21, %v1345_v22  ;;  %v4120_v21 = vld [vmem:[%s4316_s11] ss:$0 sm:$0xff] }
 0x38f   :  { %v1421_v3 = vpack.c.bf16 %v1340_v1, %v1337_v13  ;;  %v1438_v27 = vmax.bf16 %v2989_v60, %v1422_v23 }
 0x391   :  { %v1437_v8 = vmax.bf16 %v2989_v60, %v1421_v3 }
 0x393   :  { %2676 = vmatprep.mubr.msk.bf16.mxu1 %vm135_vm0, %v1437_v8 }
 0x394   :  { %2677 = vmatmul.mubr.msk.bf16.gmra.mxu1 %vm135_vm0, %v1438_v27 }
 0x396   :  { %v2642_v29 = vpop.f32.mrf.mxu1 }
 0x397   :  { %v1361_v33 = vadd.f32 %v2642_v29, %v4033_v38 }
 0x398   :  { %v1352_v25 = vpop.f32.mrf.mxu1 }
 0x399   :  { %v1353_v34 = vadd.f32 %v4033_v38, %v1352_v25 }
 0x39a   :  { %v2643_v30 = vpop.f32.mrf.mxu1 }
 0x39b   :  { %v1364_v32 = vadd.f32 %v2643_v30, %v4033_v38 }
 0x39c   :  { %v1355_v15 = vpop.f32.mrf.mxu1 }
 0x39d   :  { %v1356_v14 = vadd.f32 %v4033_v38, %v1355_v15  ;;  %v1424_v35 = vpack.c.bf16 %v1364_v32, %v1361_v33 }
 0x39f   :  { %v1423_v16 = vpack.c.bf16 %v1356_v14, %v1353_v34  ;;  %v1440_v39 = vmax.bf16 %v2989_v60, %v1424_v35 }
 0x3a1   :  { %v1439_v18 = vmax.bf16 %v2989_v60, %v1423_v16 }
 0x3a3   :  { %2680 = vmatprep.mubr.msk.bf16.mxu1 %vm135_vm0, %v1439_v18 }
 0x3a4   :  { %2681 = vmatmul.mubr.msk.bf16.gmra.mxu1 %vm135_vm0, %v1440_v39 }
 0x3a6   :  { %v2646_v43 = vpop.f32.mrf.mxu1 }
 0x3a7   :  { %v1377_v47 = vadd.f32 %v2646_v43, %v4033_v38 }
 0x3a8   :  { %v1368_v45 = vpop.f32.mrf.mxu1 }
 0x3a9   :  { %v1369_v31 = vadd.f32 %v4033_v38, %v1368_v45 }
 0x3aa   :  { %v2647_v19 = vpop.f32.mrf.mxu1 }
 0x3ab   :  { %v1380_v24 = vadd.f32 %v2647_v19, %v4033_v38 }
 0x3ac   :  { %v1371_v28 = vpop.f32.mrf.mxu1 }
 0x3ad   :  { %v1372_v44 = vadd.f32 %v4033_v38, %v1371_v28  ;;  %v1426_v53 = vpack.c.bf16 %v1380_v24, %v1377_v47 }
 0x3af   :  { %v1425_v54 = vpack.c.bf16 %v1372_v44, %v1369_v31  ;;  %v1442_v57 = vmax.bf16 %v2989_v60, %v1426_v53 }
 0x3b1   :  { %v1441_v56 = vmax.bf16 %v2989_v60, %v1425_v54 }
 0x3b3   :  { %2684 = vmatprep.mubr.msk.bf16.mxu1 %vm135_vm0, %v1441_v56 }
 0x3b4   :  { %2685 = vmatmul.mubr.msk.bf16.gmra.mxu1 %vm135_vm0, %v1442_v57 }
 0x3b6   :  { %v2650_v37 = vpop.f32.mrf.mxu1 }
 0x3b7   :  { %v1393_v40 = vadd.f32 %v2650_v37, %v4033_v38 }
 0x3b8   :  { %v1384_v59 = vpop.f32.mrf.mxu1 }
 0x3b9   :  { %v1385_v0 = vadd.f32 %v4033_v38, %v1384_v59 }
 0x3ba   :  { %v2651_v61 = vpop.f32.mrf.mxu1 }
 0x3bb   :  { %v1396_v36 = vadd.f32 %v2651_v61, %v4033_v38 }
 0x3bc   :  { %v1387_v41 = vpop.f32.mrf.mxu1 }
 0x3bd   :  { %v1388_v50 = vadd.f32 %v4033_v38, %v1387_v41  ;;  %v1428_v2 = vpack.c.bf16 %v1396_v36, %v1393_v40 }
 0x3bf   :  { %v1427_v5 = vpack.c.bf16 %v1388_v50, %v1385_v0  ;;  %v1444_v9 = vmax.bf16 %v2989_v60, %v1428_v2 }
 0x3c1   :  { %v1443_v7 = vmax.bf16 %v2989_v60, %v1427_v5 }
 0x3c3   :  { %2688 = vmatprep.mubr.msk.bf16.mxu1 %vm135_vm0, %v1443_v7 }
 0x3c4   :  { %2689 = vmatmul.mubr.msk.bf16.gmra.mxu1 %vm135_vm0, %v1444_v9 }
 0x3c6   :  { %v2654_v11 = vpop.f32.mrf.mxu1 }
 0x3c7   :  { %v1409_v52 = vadd.f32 %v2654_v11, %v4033_v38 }
 0x3c8   :  { %v1400_v42 = vpop.f32.mrf.mxu1 }
 0x3c9   :  { %v1401_v12 = vadd.f32 %v4033_v38, %v1400_v42 }
 0x3ca   :  { %v2655_v48 = vpop.f32.mrf.mxu1 }
 0x3cb   :  { %v1412_v51 = vadd.f32 %v2655_v48, %v4033_v38 }
 0x3cc   :  { %v1403_v26 = vpop.f32.mrf.mxu1 }
 0x3cd   :  { %v1404_v55 = vadd.f32 %v4033_v38, %v1403_v26  ;;  %v1430_v58 = vpack.c.bf16 %v1412_v51, %v1409_v52 }
 0x3cf   :  { %v1429_v4 = vpack.c.bf16 %v1404_v55, %v1401_v12  ;;  %v1446_v62 = vmax.bf16 %v2989_v60, %v1430_v58 }
 0x3d1   :  { %v1445_v10 = vmax.bf16 %v2989_v60, %v1429_v4 }
 0x3d3   :  { %2692 = vmatprep.mubr.msk.bf16.mxu1 %vm135_vm0, %v1445_v10 }
 0x3d4   :  { %2693 = vmatmul.mubr.msk.bf16.gmra.mxu1 %vm135_vm0, %v1446_v62 }
 0x424   :  { %v2666_v17 = vpop.f32.mrf.mxu1 }
 0x425   :  { %v1577_v63 = vadd.f32 %v2666_v17, %v4120_v21 }
 0x426   :  { %v1568_v20 = vpop.f32.mrf.mxu1 }
 0x427   :  { %v1569_v1 = vadd.f32 %v4120_v21, %v1568_v20 }
 0x428   :  { %v2667_v22 = vpop.f32.mrf.mxu1 }
 0x429   :  { %v1580_v38 = vadd.f32 %v2667_v22, %v4120_v21 }
 0x42a   :  { %v1571_v13 = vpop.f32.mrf.mxu1 }
 0x42b   :  { %v1572_v23 = vadd.f32 %v4120_v21, %v1571_v13  ;;  %v1696_v3 = vpack.c.bf16 %v1580_v38, %v1577_v63 }
 0x42d   :  { %v1695_v8 = vpack.c.bf16 %v1572_v23, %v1569_v1  ;;  %v1712_v29 = vmax.bf16 %v2989_v60, %v1696_v3 }
 0x42f   :  { %v1711_v27 = vmax.bf16 %v2989_v60, %v1695_v8 }
 0x431   :  { %2712 = vmatprep.mubr.bf16.mxu0 %v1711_v27 }
 0x432   :  { %2713 = vmatmul.mubr.bf16.vlgmr.msra.gmra.mxu0 %v1712_v29 }
 0x434   :  { %v2670_v25 = vpop.f32.mrf.mxu1 }
 0x435   :  { %v1593_v15 = vadd.f32 %v2670_v25, %v4120_v21 }
 0x436   :  { %v1584_v30 = vpop.f32.mrf.mxu1 }
 0x437   :  { %v1585_v14 = vadd.f32 %v4120_v21, %v1584_v30 }
 0x438   :  { %v2671_v32 = vpop.f32.mrf.mxu1 }
 0x439   :  { %v1596_v33 = vadd.f32 %v2671_v32, %v4120_v21 }
 0x43a   :  { %v1587_v34 = vpop.f32.mrf.mxu1 }
 0x43b   :  { %v1588_v35 = vadd.f32 %v4120_v21, %v1587_v34  ;;  %v1698_v16 = vpack.c.bf16 %v1596_v33, %v1593_v15 }
 0x43d   :  { %v1697_v18 = vpack.c.bf16 %v1588_v35, %v1585_v14  ;;  %v1714_v6 = vmax.bf16 %v2989_v60, %v1698_v16 }
 0x43f   :  { %v1713_v39 = vmax.bf16 %v2989_v60, %v1697_v18 }
 0x441   :  { %2716 = vmatprep.mubr.bf16.mxu0 %v1713_v39 }
 0x442   :  { %2717 = vmatmul.mubr.bf16.gmra.mxu0 %v1714_v6 }
 0x444   :  { %v2674_v43 = vpop.f32.mrf.mxu1 }
 0x445   :  { %v1609_v24 = vadd.f32 %v2674_v43, %v4120_v21 }
 0x446   :  { %v1600_v45 = vpop.f32.mrf.mxu1 }
 0x447   :  { %v1601_v28 = vadd.f32 %v4120_v21, %v1600_v45 }
 0x448   :  { %v2675_v46 = vpop.f32.mrf.mxu1 }
 0x449   :  { %v1612_v19 = vadd.f32 %v2675_v46, %v4120_v21 }
 0x44a   :  { %v1603_v47 = vpop.f32.mrf.mxu1 }
 0x44b   :  { %v1604_v49 = vadd.f32 %v4120_v21, %v1603_v47  ;;  %v1700_v31 = vpack.c.bf16 %v1612_v19, %v1609_v24 }
 0x44d   :  { %v1699_v44 = vpack.c.bf16 %v1604_v49, %v1601_v28  ;;  %v1716_v54 = vmax.bf16 %v2989_v60, %v1700_v31 }
 0x44f   :  { %v1715_v53 = vmax.bf16 %v2989_v60, %v1699_v44 }
 0x451   :  { %2720 = vmatprep.mubr.bf16.mxu0 %v1715_v53  ;;  %v4173_v53 = vld [vmem:[%s4317_s13] ss:$0 sm:$0xff] }
 0x452   :  { %2721 = vmatmul.mubr.bf16.gmra.mxu0 %v1716_v54 }
 0x454   :  { %v2678_v56 = vpop.f32.mrf.mxu1 }
 0x455   :  { %v1625_v61 = vadd.f32 %v2678_v56, %v4120_v21 }
 0x456   :  { %v1616_v57 = vpop.f32.mrf.mxu1 }
 0x457   :  { %v1617_v40 = vadd.f32 %v4120_v21, %v1616_v57 }
 0x458   :  { %v2679_v37 = vpop.f32.mrf.mxu1 }
 0x459   :  { %v1628_v59 = vadd.f32 %v2679_v37, %v4120_v21 }
 0x45a   :  { %v1619_v36 = vpop.f32.mrf.mxu1 }
 0x45b   :  { %v1620_v41 = vadd.f32 %v4120_v21, %v1619_v36  ;;  %v1702_v0 = vpack.c.bf16 %v1628_v59, %v1625_v61 }
 0x45d   :  { %v1701_v50 = vpack.c.bf16 %v1620_v41, %v1617_v40  ;;  %v1718_v5 = vmax.bf16 %v2989_v60, %v1702_v0 }
 0x45f   :  { %v1717_v2 = vmax.bf16 %v2989_v60, %v1701_v50 }
 0x461   :  { %2724 = vmatprep.mubr.bf16.mxu0 %v1717_v2 }
 0x462   :  { %2725 = vmatmul.mubr.bf16.gmra.mxu0 %v1718_v5 }
 0x464   :  { %v2682_v7 = vpop.f32.mrf.mxu1 }
 0x465   :  { %v1641_v48 = vadd.f32 %v2682_v7, %v4120_v21 }
 0x466   :  { %v1632_v9 = vpop.f32.mrf.mxu1 }
 0x467   :  { %v1633_v52 = vadd.f32 %v4120_v21, %v1632_v9 }
 0x468   :  { %v2683_v11 = vpop.f32.mrf.mxu1 }
 0x469   :  { %v1644_v42 = vadd.f32 %v2683_v11, %v4120_v21 }
 0x46a   :  { %v1635_v51 = vpop.f32.mrf.mxu1 }
 0x46b   :  { %v1636_v26 = vadd.f32 %v4120_v21, %v1635_v51  ;;  %v1704_v12 = vpack.c.bf16 %v1644_v42, %v1641_v48 }
 0x46d   :  { %v1703_v55 = vpack.c.bf16 %v1636_v26, %v1633_v52  ;;  %v1720_v4 = vmax.bf16 %v2989_v60, %v1704_v12 }
 0x46f   :  { %v1719_v58 = vmax.bf16 %v2989_v60, %v1703_v55 }
 0x471   :  { %2728 = vmatprep.mubr.bf16.mxu0 %v1719_v58 }
 0x472   :  { %2729 = vmatmul.mubr.bf16.gmra.mxu0 %v1720_v4 }
 0x474   :  { %v2686_v10 = vpop.f32.mrf.mxu1 }
 0x475   :  { %v1657_v22 = vadd.f32 %v2686_v10, %v4120_v21 }
 0x476   :  { %v1648_v62 = vpop.f32.mrf.mxu1 }
 0x477   :  { %v1649_v63 = vadd.f32 %v4120_v21, %v1648_v62 }
 0x478   :  { %v2687_v17 = vpop.f32.mrf.mxu1 }
 0x479   :  { %v1660_v20 = vadd.f32 %v2687_v17, %v4120_v21 }
 0x47a   :  { %v1651_v38 = vpop.f32.mrf.mxu1 }
 0x47b   :  { %v1652_v13 = vadd.f32 %v4120_v21, %v1651_v38  ;;  %v1706_v1 = vpack.c.bf16 %v1660_v20, %v1657_v22 }
 0x47d   :  { %v1705_v23 = vpack.c.bf16 %v1652_v13, %v1649_v63  ;;  %v1722_v8 = vmax.bf16 %v2989_v60, %v1706_v1 }
 0x47f   :  { %v1721_v3 = vmax.bf16 %v2989_v60, %v1705_v23 }
 0x481   :  { %2732 = vmatprep.mubr.bf16.mxu0 %v1721_v3 }
 0x482   :  { %2733 = vmatmul.mubr.bf16.gmra.mxu0 %v1722_v8 }
 0x484   :  { %v2690_v27 = vpop.f32.mrf.mxu1 }
 0x485   :  { %v1673_v32 = vadd.f32 %v2690_v27, %v4120_v21 }
 0x486   :  { %v1664_v29 = vpop.f32.mrf.mxu1 }
 0x487   :  { %v1665_v15 = vadd.f32 %v4120_v21, %v1664_v29 }
 0x488   :  { %v2691_v25 = vpop.f32.mrf.mxu1 }
 0x489   :  { %v1676_v30 = vadd.f32 %v2691_v25, %v4120_v21 }
 0x48a   :  { %v1667_v33 = vpop.f32.mrf.mxu1 }
 0x48b   :  { %v1668_v34 = vadd.f32 %v4120_v21, %v1667_v33  ;;  %v1708_v14 = vpack.c.bf16 %v1676_v30, %v1673_v32 }
 0x48d   :  { %v1707_v35 = vpack.c.bf16 %v1668_v34, %v1665_v15  ;;  %v1724_v18 = vmax.bf16 %v2989_v60, %v1708_v14 }
 0x48f   :  { %v1723_v16 = vmax.bf16 %v2989_v60, %v1707_v35 }
 0x491   :  { %2736 = vmatprep.mubr.bf16.mxu0 %v1723_v16 }
 0x492   :  { %2737 = vmatmul.mubr.bf16.gmra.mxu0 %v1724_v18 }
 0x494   :  { %v2694_v39 = vpop.f32.mrf.mxu1 }
 0x495   :  { %v1689_v46 = vadd.f32 %v2694_v39, %v4120_v21 }
 0x496   :  { %v1680_v6 = vpop.f32.mrf.mxu1 }
 0x497   :  { %v1681_v24 = vadd.f32 %v4120_v21, %v1680_v6 }
 0x498   :  { %v2695_v43 = vpop.f32.mrf.mxu1 }
 0x499   :  { %v1692_v45 = vadd.f32 %v2695_v43, %v4120_v21 }
 0x49a   :  { %v1683_v19 = vpop.f32.mrf.mxu1 }
 0x49b   :  { %v1684_v47 = vadd.f32 %v4120_v21, %v1683_v19  ;;  %v1710_v28 = vpack.c.bf16 %v1692_v45, %v1689_v46 }
 0x49d   :  { %v1709_v49 = vpack.c.bf16 %v1684_v47, %v1681_v24  ;;  %v1726_v44 = vmax.bf16 %v2989_v60, %v1710_v28 }
 0x49f   :  { %v1725_v31 = vmax.bf16 %v2989_v60, %v1709_v49 }
 0x4a1   :  { %2740 = vmatprep.mubr.bf16.mxu0 %v1725_v31 }
 0x4a2   :  { %2741 = vmatmul.mubr.bf16.gmra.mxu0 %v1726_v44 }
 0x4f2   :  { %v2714_v54 = vpop.f32.mrf.mxu0 }
 0x4f3   :  { %v1841_v56 = vadd.f32 %v2714_v54, %v4173_v53 }
 0x4f4   :  { %v1832_v57 = vpop.f32.mrf.mxu0 }
 0x4f5   :  { %v2378_v37 = vmul.f32 -1.442695, %v1841_v56  ;;  %v1833_v21 = vadd.f32 %v4173_v53, %v1832_v57 }
 0x4f6   :  { %v2715_v59 = vpop.f32.mrf.mxu0 }
 0x4f7   :  { %2861 = vpow2.f32 %v2378_v37  ;;  %v2376_v61 = vmul.f32 -1.442695, %v1833_v21  ;;  %v1844_v36 = vadd.f32 %v2715_v59, %v4173_v53 }
 0x4f8   :  { %v1835_v60 = vpop.f32.mrf.mxu0 }
 0x4f9   :  { %2863 = vpow2.f32 %v2376_v61  ;;  %v2379_v40 = vmul.f32 -1.442695, %v1844_v36  ;;  %v1836_v41 = vadd.f32 %v4173_v53, %v1835_v60 }
 0x4fb   :  { %2865 = vpow2.f32 %v2379_v40  ;;  %v2377_v0 = vmul.f32 -1.442695, %v1836_v41 }
 0x4fd   :  { %2867 = vpow2.f32 %v2377_v0 }
 0x502   :  { %v2718_v50 = vpop.f32.mrf.mxu0 }
 0x503   :  { %v1857_v2 = vadd.f32 %v2718_v50, %v4173_v53 }
 0x504   :  { %v2862_v5 = vpop.eup %2861  ;;  %v1848_v7 = vpop.f32.mrf.mxu0 }
 0x505   :  { %v2057_v9 = vadd.f32 1.0, %v2862_v5  ;;  %v2382_v11 = vmul.f32 -1.442695, %v1857_v2  ;;  %v1849_v42 = vadd.f32 %v4173_v53, %v1848_v7 }
 0x506   :  { %v2864_v48 = vpop.eup %2863  ;;  %v2719_v51 = vpop.f32.mrf.mxu0 }
 0x507   :  { %2869 = vrcp.f32 %v2057_v9  ;;  %v2055_v52 = vadd.f32 1.0, %v2864_v48  ;;  %v2380_v26 = vmul.f32 -1.442695, %v1849_v42  ;;  %v1860_v12 = vadd.f32 %v2719_v51, %v4173_v53 }
 0x508   :  { %v2866_v55 = vpop.eup %2865  ;;  %2871 = vpow2.f32 %v2382_v11  ;;  %v1851_v58 = vpop.f32.mrf.mxu0 }
 0x509   :  { %2873 = vrcp.f32 %v2055_v52  ;;  %v2058_v4 = vadd.f32 1.0, %v2866_v55  ;;  %v2383_v10 = vmul.f32 -1.442695, %v1860_v12  ;;  %v1852_v62 = vadd.f32 %v4173_v53, %v1851_v58 }
 0x50a   :  { %v2868_v17 = vpop.eup %2867  ;;  %2875 = vpow2.f32 %v2380_v26 }
 0x50b   :  { %2877 = vrcp.f32 %v2058_v4  ;;  %v2056_v20 = vadd.f32 1.0, %v2868_v17  ;;  %v2381_v22 = vmul.f32 -1.442695, %v1852_v62 }
 0x50c   :  { %2879 = vpow2.f32 %v2383_v10 }
 0x50d   :  { %2881 = vrcp.f32 %v2056_v20 }
 0x50e   :  { %2883 = vpow2.f32 %v2381_v22 }
 0x512   :  { %v2722_v38 = vpop.f32.mrf.mxu0 }
 0x513   :  { %v1873_v63 = vadd.f32 %v2722_v38, %v4173_v53 }
 0x514   :  { %v2870_v13 = vpop.eup %2869  ;;  %v1864_v1 = vpop.f32.mrf.mxu0 }
 0x515   :  { %v2872_v23 = vpop.eup %2871  ;;  %2153 = vst [vmem:[%s4311_s14 + $0x40] sm:$0xff] %v2870_v13  ;;  %v2386_v3 = vmul.f32 -1.442695, %v1873_v63  ;;  %v1865_v8 = vadd.f32 %v4173_v53, %v1864_v1 }
 0x516   :  { %v2874_v27 = vpop.eup %2873  ;;  %v2061_v29 = vadd.f32 1.0, %v2872_v23  ;;  %v2723_v25 = vpop.f32.mrf.mxu0 }
 0x517   :  { %v2876_v30 = vpop.eup %2875  ;;  %2151 = vst [vmem:[%s4311_s14] sm:$0xff] %v2874_v27  ;;  %2885 = vpow2.f32 %v2386_v3  ;;  %v2384_v32 = vmul.f32 -1.442695, %v1865_v8  ;;  %v1876_v33 = vadd.f32 %v2723_v25, %v4173_v53 }
 0x518   :  { %v2878_v15 = vpop.eup %2877  ;;  %2887 = vrcp.f32 %v2061_v29  ;;  %v2059_v34 = vadd.f32 1.0, %v2876_v30  ;;  %v1867_v14 = vpop.f32.mrf.mxu0 }
 0x519   :  { %v2880_v35 = vpop.eup %2879  ;;  %2154 = vst [vmem:[%s4311_s14 + $0x60] sm:$0xff] %v2878_v15  ;;  %2889 = vpow2.f32 %v2384_v32  ;;  %v2387_v16 = vmul.f32 -1.442695, %v1876_v33  ;;  %v1868_v18 = vadd.f32 %v4173_v53, %v1867_v14 }
 0x51a   :  { %v2882_v39 = vpop.eup %2881  ;;  %2891 = vrcp.f32 %v2059_v34  ;;  %v2062_v6 = vadd.f32 1.0, %v2880_v35 }
 0x51b   :  { %v2884_v43 = vpop.eup %2883  ;;  %2152 = vst [vmem:[%s4311_s14 + $0x20] sm:$0xff] %v2882_v39  ;;  %2893 = vpow2.f32 %v2387_v16  ;;  %v2385_v45 = vmul.f32 -1.442695, %v1868_v18 }
 0x51c   :  { %2895 = vrcp.f32 %v2062_v6  ;;  %v2060_v46 = vadd.f32 1.0, %v2884_v43 }
 0x51d   :  { %2897 = vpow2.f32 %v2385_v45 }
 0x51e   :  { %2899 = vrcp.f32 %v2060_v46 }
 0x522   :  { %v2726_v19 = vpop.f32.mrf.mxu0 }
 0x523   :  { %v1889_v24 = vadd.f32 %v2726_v19, %v4173_v53 }
 0x524   :  { %v2886_v47 = vpop.eup %2885  ;;  %v1880_v28 = vpop.f32.mrf.mxu0 }
 0x525   :  { %v2888_v49 = vpop.eup %2887  ;;  %v2065_v31 = vadd.f32 1.0, %v2886_v47  ;;  %v2390_v44 = vmul.f32 -1.442695, %v1889_v24  ;;  %v1881_v54 = vadd.f32 %v4173_v53, %v1880_v28 }
 0x526   :  { %v2890_v56 = vpop.eup %2889  ;;  %2157 = vst [vmem:[%s4311_s14 + $0xc0] sm:$0xff] %v2888_v49  ;;  %v2727_v57 = vpop.f32.mrf.mxu0 }
 0x527   :  { %v2892_v37 = vpop.eup %2891  ;;  %2901 = vrcp.f32 %v2065_v31  ;;  %v2063_v21 = vadd.f32 1.0, %v2890_v56  ;;  %v2388_v59 = vmul.f32 -1.442695, %v1881_v54  ;;  %v1892_v61 = vadd.f32 %v2727_v57, %v4173_v53 }
 0x528   :  { %v2894_v36 = vpop.eup %2893  ;;  %2155 = vst [vmem:[%s4311_s14 + $0x80] sm:$0xff] %v2892_v37  ;;  %2903 = vpow2.f32 %v2390_v44  ;;  %v1883_v60 = vpop.f32.mrf.mxu0 }
 0x529   :  { %v2896_v40 = vpop.eup %2895  ;;  %2905 = vrcp.f32 %v2063_v21  ;;  %v2066_v41 = vadd.f32 1.0, %v2894_v36  ;;  %v2391_v0 = vmul.f32 -1.442695, %v1892_v61  ;;  %v1884_v50 = vadd.f32 %v4173_v53, %v1883_v60 }
 0x52a   :  { %v2898_v2 = vpop.eup %2897  ;;  %2158 = vst [vmem:[%s4311_s14 + $0xe0] sm:$0xff] %v2896_v40  ;;  %2907 = vpow2.f32 %v2388_v59 }
 0x52b   :  { %v2900_v5 = vpop.eup %2899  ;;  %2909 = vrcp.f32 %v2066_v41  ;;  %v2064_v7 = vadd.f32 1.0, %v2898_v2  ;;  %v2389_v9 = vmul.f32 -1.442695, %v1884_v50 }
 0x52c   :  { %2156 = vst [vmem:[%s4311_s14 + $0xa0] sm:$0xff] %v2900_v5  ;;  %2911 = vpow2.f32 %v2391_v0 }
 0x52d   :  { %2913 = vrcp.f32 %v2064_v7 }
 0x52e   :  { %2915 = vpow2.f32 %v2389_v9 }
 0x532   :  { %v2730_v11 = vpop.f32.mrf.mxu0 }
 0x533   :  { %v1905_v42 = vadd.f32 %v2730_v11, %v4173_v53 }
 0x534   :  { %v2902_v48 = vpop.eup %2901  ;;  %v1896_v51 = vpop.f32.mrf.mxu0 }
 0x535   :  { %v2904_v52 = vpop.eup %2903  ;;  %2161 = vst [vmem:[%s4311_s14 + $0x140] sm:$0xff] %v2902_v48  ;;  %v2394_v26 = vmul.f32 -1.442695, %v1905_v42  ;;  %v1897_v12 = vadd.f32 %v4173_v53, %v1896_v51 }
 0x536   :  { %v2906_v55 = vpop.eup %2905  ;;  %v2069_v58 = vadd.f32 1.0, %v2904_v52  ;;  %v2731_v4 = vpop.f32.mrf.mxu0 }
 0x537   :  { %v2908_v10 = vpop.eup %2907  ;;  %2159 = vst [vmem:[%s4311_s14 + $0x100] sm:$0xff] %v2906_v55  ;;  %2917 = vpow2.f32 %v2394_v26  ;;  %v2392_v62 = vmul.f32 -1.442695, %v1897_v12  ;;  %v1908_v17 = vadd.f32 %v2731_v4, %v4173_v53 }
 0x538   :  { %v2910_v20 = vpop.eup %2909  ;;  %2919 = vrcp.f32 %v2069_v58  ;;  %v2067_v22 = vadd.f32 1.0, %v2908_v10  ;;  %v1899_v38 = vpop.f32.mrf.mxu0 }
 0x539   :  { %v2912_v63 = vpop.eup %2911  ;;  %2162 = vst [vmem:[%s4311_s14 + $0x160] sm:$0xff] %v2910_v20  ;;  %2921 = vpow2.f32 %v2392_v62  ;;  %v2395_v13 = vmul.f32 -1.442695, %v1908_v17  ;;  %v1900_v1 = vadd.f32 %v4173_v53, %v1899_v38 }
 0x53a   :  { %v2914_v23 = vpop.eup %2913  ;;  %2923 = vrcp.f32 %v2067_v22  ;;  %v2070_v3 = vadd.f32 1.0, %v2912_v63 }
 0x53b   :  { %v2916_v8 = vpop.eup %2915  ;;  %2160 = vst [vmem:[%s4311_s14 + $0x120] sm:$0xff] %v2914_v23  ;;  %2925 = vpow2.f32 %v2395_v13  ;;  %v2393_v27 = vmul.f32 -1.442695, %v1900_v1 }
 0x53c   :  { %2927 = vrcp.f32 %v2070_v3  ;;  %v2068_v29 = vadd.f32 1.0, %v2916_v8 }
 0x53d   :  { %2929 = vpow2.f32 %v2393_v27 }
 0x53e   :  { %2931 = vrcp.f32 %v2068_v29 }
 0x542   :  { %v2734_v25 = vpop.f32.mrf.mxu0 }
 0x543   :  { %v1921_v30 = vadd.f32 %v2734_v25, %v4173_v53 }
 0x544   :  { %v2918_v32 = vpop.eup %2917  ;;  %v1912_v33 = vpop.f32.mrf.mxu0 }
 0x545   :  { %v2920_v15 = vpop.eup %2919  ;;  %v2073_v34 = vadd.f32 1.0, %v2918_v32  ;;  %v2398_v14 = vmul.f32 -1.442695, %v1921_v30  ;;  %v1913_v35 = vadd.f32 %v4173_v53, %v1912_v33 }
 0x546   :  { %v2922_v16 = vpop.eup %2921  ;;  %2165 = vst [vmem:[%s4311_s14 + $0x1c0] sm:$0xff] %v2920_v15  ;;  %v2735_v18 = vpop.f32.mrf.mxu0 }
 0x547   :  { %v2924_v39 = vpop.eup %2923  ;;  %2933 = vrcp.f32 %v2073_v34  ;;  %v2071_v6 = vadd.f32 1.0, %v2922_v16  ;;  %v2396_v43 = vmul.f32 -1.442695, %v1913_v35  ;;  %v1924_v45 = vadd.f32 %v2735_v18, %v4173_v53 }
 0x548   :  { %v2926_v46 = vpop.eup %2925  ;;  %2163 = vst [vmem:[%s4311_s14 + $0x180] sm:$0xff] %v2924_v39  ;;  %2935 = vpow2.f32 %v2398_v14  ;;  %v1915_v19 = vpop.f32.mrf.mxu0 }
 0x549   :  { %v2928_v24 = vpop.eup %2927  ;;  %2937 = vrcp.f32 %v2071_v6  ;;  %v2074_v47 = vadd.f32 1.0, %v2926_v46  ;;  %v2399_v28 = vmul.f32 -1.442695, %v1924_v45  ;;  %v1916_v49 = vadd.f32 %v4173_v53, %v1915_v19 }
 0x54a   :  { %v2930_v31 = vpop.eup %2929  ;;  %2166 = vst [vmem:[%s4311_s14 + $0x1e0] sm:$0xff] %v2928_v24  ;;  %2939 = vpow2.f32 %v2396_v43 }
 0x54b   :  { %v2932_v44 = vpop.eup %2931  ;;  %2941 = vrcp.f32 %v2074_v47  ;;  %v2072_v54 = vadd.f32 1.0, %v2930_v31  ;;  %v2397_v56 = vmul.f32 -1.442695, %v1916_v49 }
 0x54c   :  { %2164 = vst [vmem:[%s4311_s14 + $0x1a0] sm:$0xff] %v2932_v44  ;;  %2943 = vpow2.f32 %v2399_v28 }
 0x54d   :  { %2945 = vrcp.f32 %v2072_v54 }
 0x54e   :  { %2947 = vpow2.f32 %v2397_v56 }
 0x552   :  { %v2738_v57 = vpop.f32.mrf.mxu0 }
 0x553   :  { %v1937_v37 = vadd.f32 %v2738_v57, %v4173_v53 }
 0x554   :  { %v2934_v21 = vpop.eup %2933  ;;  %v1928_v59 = vpop.f32.mrf.mxu0 }
 0x555   :  { %v2936_v61 = vpop.eup %2935  ;;  %2169 = vst [vmem:[%s4311_s14 + $0x240] sm:$0xff] %v2934_v21  ;;  %v2402_v36 = vmul.f32 -1.442695, %v1937_v37  ;;  %v1929_v60 = vadd.f32 %v4173_v53, %v1928_v59 }
 0x556   :  { %v2938_v40 = vpop.eup %2937  ;;  %v2077_v41 = vadd.f32 1.0, %v2936_v61  ;;  %v2739_v0 = vpop.f32.mrf.mxu0 }
 0x557   :  { %v2940_v50 = vpop.eup %2939  ;;  %2167 = vst [vmem:[%s4311_s14 + $0x200] sm:$0xff] %v2938_v40  ;;  %2949 = vpow2.f32 %v2402_v36  ;;  %v2400_v2 = vmul.f32 -1.442695, %v1929_v60  ;;  %v1940_v5 = vadd.f32 %v2739_v0, %v4173_v53 }
 0x558   :  { %v2942_v7 = vpop.eup %2941  ;;  %2951 = vrcp.f32 %v2077_v41  ;;  %v2075_v9 = vadd.f32 1.0, %v2940_v50  ;;  %v1931_v11 = vpop.f32.mrf.mxu0 }
 0x559   :  { %v2944_v42 = vpop.eup %2943  ;;  %2170 = vst [vmem:[%s4311_s14 + $0x260] sm:$0xff] %v2942_v7  ;;  %2953 = vpow2.f32 %v2400_v2  ;;  %v2403_v48 = vmul.f32 -1.442695, %v1940_v5  ;;  %v1932_v51 = vadd.f32 %v4173_v53, %v1931_v11 }
 0x55a   :  { %v2946_v52 = vpop.eup %2945  ;;  %2955 = vrcp.f32 %v2075_v9  ;;  %v2078_v26 = vadd.f32 1.0, %v2944_v42 }
 0x55b   :  { %v2948_v12 = vpop.eup %2947  ;;  %2168 = vst [vmem:[%s4311_s14 + $0x220] sm:$0xff] %v2946_v52  ;;  %2957 = vpow2.f32 %v2403_v48  ;;  %v2401_v55 = vmul.f32 -1.442695, %v1932_v51 }
 0x55c   :  { %2959 = vrcp.f32 %v2078_v26  ;;  %v2076_v58 = vadd.f32 1.0, %v2948_v12 }
 0x55d   :  { %2961 = vpow2.f32 %v2401_v55 }
 0x55e   :  { %2963 = vrcp.f32 %v2076_v58 }
 0x562   :  { %v2742_v4 = vpop.f32.mrf.mxu0 }
 0x563   :  { %v1953_v10 = vadd.f32 %v2742_v4, %v4173_v53 }
 0x564   :  { %v2950_v62 = vpop.eup %2949  ;;  %v1944_v17 = vpop.f32.mrf.mxu0 }
 0x565   :  { %v2952_v20 = vpop.eup %2951  ;;  %v2081_v22 = vadd.f32 1.0, %v2950_v62  ;;  %v2406_v38 = vmul.f32 -1.442695, %v1953_v10  ;;  %v1945_v63 = vadd.f32 %v4173_v53, %v1944_v17 }
 0x566   :  { %v2954_v13 = vpop.eup %2953  ;;  %2173 = vst [vmem:[%s4311_s14 + $0x2c0] sm:$0xff] %v2952_v20  ;;  %v2743_v1 = vpop.f32.mrf.mxu0 }
 0x567   :  { %v2956_v23 = vpop.eup %2955  ;;  %2965 = vrcp.f32 %v2081_v22  ;;  %v2079_v3 = vadd.f32 1.0, %v2954_v13  ;;  %v2404_v8 = vmul.f32 -1.442695, %v1945_v63  ;;  %v1956_v27 = vadd.f32 %v2743_v1, %v4173_v53 }
 0x568   :  { %v2958_v29 = vpop.eup %2957  ;;  %2171 = vst [vmem:[%s4311_s14 + $0x280] sm:$0xff] %v2956_v23  ;;  %2967 = vpow2.f32 %v2406_v38  ;;  %v1947_v25 = vpop.f32.mrf.mxu0 }
 0x569   :  { %v2960_v30 = vpop.eup %2959  ;;  %2969 = vrcp.f32 %v2079_v3  ;;  %v2082_v32 = vadd.f32 1.0, %v2958_v29  ;;  %v2407_v33 = vmul.f32 -1.442695, %v1956_v27  ;;  %v1948_v15 = vadd.f32 %v4173_v53, %v1947_v25 }
 0x56a   :  { %v2962_v34 = vpop.eup %2961  ;;  %2174 = vst [vmem:[%s4311_s14 + $0x2e0] sm:$0xff] %v2960_v30  ;;  %2971 = vpow2.f32 %v2404_v8 }
 0x56b   :  { %v2964_v14 = vpop.eup %2963  ;;  %2973 = vrcp.f32 %v2082_v32  ;;  %v2080_v35 = vadd.f32 1.0, %v2962_v34  ;;  %v2405_v16 = vmul.f32 -1.442695, %v1948_v15 }
 0x56c   :  { %2172 = vst [vmem:[%s4311_s14 + $0x2a0] sm:$0xff] %v2964_v14  ;;  %2975 = vpow2.f32 %v2407_v33 }
 0x56d   :  { %2977 = vrcp.f32 %v2080_v35 }
 0x56e   :  { %2979 = vpow2.f32 %v2405_v16 }
 0x574   :  { %v2966_v18 = vpop.eup %2965 }
 0x575   :  { %v2968_v39 = vpop.eup %2967  ;;  %2177 = vst [vmem:[%s4311_s14 + $0x340] sm:$0xff] %v2966_v18 }
 0x576   :  { %v2970_v53 = vpop.eup %2969  ;;  %v2085_v6 = vadd.f32 1.0, %v2968_v39 }
 0x577   :  { %v2972_v43 = vpop.eup %2971  ;;  %2175 = vst [vmem:[%s4311_s14 + $0x300] sm:$0xff] %v2970_v53 }
 0x578   :  { %v2974_v45 = vpop.eup %2973  ;;  %2981 = vrcp.f32 %v2085_v6  ;;  %v2083_v46 = vadd.f32 1.0, %v2972_v43 }
 0x579   :  { %v2976_v19 = vpop.eup %2975  ;;  %2178 = vst [vmem:[%s4311_s14 + $0x360] sm:$0xff] %v2974_v45 }
 0x57a   :  { %v2978_v24 = vpop.eup %2977  ;;  %2983 = vrcp.f32 %v2083_v46  ;;  %v2086_v47 = vadd.f32 1.0, %v2976_v19 }
 0x57b   :  { %v2980_v28 = vpop.eup %2979  ;;  %2176 = vst [vmem:[%s4311_s14 + $0x320] sm:$0xff] %v2978_v24 }
 0x57c   :  { %2985 = vrcp.f32 %v2086_v47  ;;  %v2084_v49 = vadd.f32 1.0, %v2980_v28 }
 0x57e   :  { %2987 = vrcp.f32 %v2084_v49 }
 0x585   :  { %v2982_v31 = vpop.eup %2981 }
 0x586   :  { %2181 = vst [vmem:[%s4311_s14 + $0x3c0] sm:$0xff] %v2982_v31 }
 0x587   :  { %v2984_v44 = vpop.eup %2983 }
 0x588   :  { %2179 = vst [vmem:[%s4311_s14 + $0x380] sm:$0xff] %v2984_v44 }
 0x589   :  { %v2986_v54 = vpop.eup %2985 }
 0x58a   :  { %2182 = vst [vmem:[%s4311_s14 + $0x3e0] sm:$0xff] %v2986_v54 }
 0x58b   :  { %v2988_v56 = vpop.eup %2987 }
 0x58c   :  { %2180 = vst [vmem:[%s4311_s14 + $0x3a0] sm:$0xff] %v2988_v56 }

</bundles_post_ra>
